<compile_context>
chip_gen: v6e
topology: v6e:2x2x1
jax: 0.10.0
libtpu: 0.0.40
codegen_flags: <defaults>
</compile_context>

<pallas_src>
import math

import jax
import jax.numpy as jnp
from jax.experimental import pallas as pl
from jax.experimental.pallas import tpu as pltpu


def _round_up(x, m):
    return (x + m - 1) // m * m


# ---------------------------- the Pallas kernel ----------------------------
def _make_token_embedding_kernel(num_v_tiles, scale, table_dtype):
    """Build the kernel with compile-time choices baked in (vocab tiling, dtype path)."""
    fold_scale = jnp.dtype(table_dtype) == jnp.dtype(jnp.float32)

    def kernel(ids_ref, table_ref, out_ref):
        # ids_ref:   (TOK_TILE, 1)      int32  -- token ids, one per sublane
        # table_ref: (V_TILE, E)        table dtype -- one vocab tile of the embedding table
        # out_ref:   (TOK_TILE, E)      table dtype -- scaled embeddings (revisited across k)
        v_tile = table_ref.shape[0]
        tok = ids_ref.shape[0]

        ids = ids_ref[...]                                              # (TOK, 1)
        iota = jax.lax.broadcasted_iota(jnp.int32, (tok, v_tile), 1)    # local vocab row ids
        if num_v_tiles > 1:
            iota = iota + pl.program_id(1) * v_tile                     # -> global vocab rows

        if fold_scale:
            # f32 table: fold sqrt(E) into the select constant -> no epilogue multiply.
            onehot = jnp.where(ids == iota, jnp.float32(scale), jnp.float32(0.0))
            part = jnp.dot(onehot, table_ref[...], preferred_element_type=jnp.float32)
        else:
            # bf16 (etc.) table: exact 0/1 one-hot in table dtype -> MXU-native dot, f32 acc;
            # scale applied once on the gathered (TOK, E) tile (folding would round the scale).
            onehot = (ids == iota).astype(table_ref.dtype)
            part = jnp.dot(onehot, table_ref[...], preferred_element_type=jnp.float32)
            part = part * jnp.float32(scale)

        if num_v_tiles == 1:
            out_ref[...] = part.astype(out_ref.dtype)
        else:
            # Output block is revisited across the vocab reduction axis: accumulate partials.
            @pl.when(pl.program_id(1) == 0)
            def _():
                out_ref[...] = jnp.zeros_like(out_ref)

            out_ref[...] += part.astype(out_ref.dtype)

    return kernel


# ---------------------------- JAX wrapper ----------------------------
def token_embedding(tokens, table, *, tok_tile=512, vocab_tile=2048):
    """tokens: integer array of any shape; table: (V, E) embedding table.

    Returns embeddings of shape tokens.shape + (E,) in the table's dtype, scaled by sqrt(E)
    (matches TokenEmbedding.forward: embedding(tokens.long()) * sqrt(embedding_dim)).
    """
    vocab, emb_dim = table.shape
    orig_shape = tokens.shape
    out_dtype = table.dtype
    scale = math.sqrt(emb_dim)

    # ---- token-axis tiling (flatten, pad to a sublane-aligned tile) ----
    flat = tokens.reshape(-1).astype(jnp.int32)          # tokens.long() equivalent
    n = flat.shape[0]
    tile = tok_tile if n >= tok_tile else _round_up(max(n, 1), 8)
    n_pad = _round_up(n, tile)
    flat = jnp.pad(flat, (0, n_pad - n))                 # padded ids gather row 0; sliced off
    ids2d = flat.reshape(n_pad, 1)                       # ids along sublanes (column layout)

    # ---- vocab-axis tiling (reduction axis; bounds the table's VMEM footprint) ----
    v_tile = _round_up(min(vocab, vocab_tile), 8)
    v_pad = _round_up(vocab, v_tile)
    tbl = table if v_pad == vocab else jnp.pad(table, ((0, v_pad - vocab), (0, 0)))
    num_v = v_pad // v_tile

    # ---- explicit VMEM budget: double-buffered blocks + one-hot intermediate + headroom ----
    itemsize = jnp.dtype(table.dtype).itemsize
    blk_bytes = (v_tile * emb_dim * itemsize            # table tile
                 + tile * emb_dim * itemsize            # output tile
                 + tile * 128 * 4                       # ids tile (lane-padded int32 column)
                 + tile * v_tile * max(itemsize, 2))    # one-hot intermediate
    vmem_limit = int(min(64 << 20, max(2 * blk_bytes + (8 << 20), 32 << 20)))

    kernel = _make_token_embedding_kernel(num_v, scale, table.dtype)

    out = pl.pallas_call(
        kernel,
        out_shape=jax.ShapeDtypeStruct((n_pad, emb_dim), out_dtype),
        grid_spec=pltpu.PrefetchScalarGridSpec(
            num_scalar_prefetch=0,
            grid=(n_pad // tile, num_v),
            in_specs=[
                # ids: re-fetched only when the token-tile index changes (never per vocab step)
                pl.BlockSpec((tile, 1), lambda i, k: (i, 0)),
                # table: streams one vocab tile per k step (stays resident when num_v == 1)
                pl.BlockSpec((v_tile, emb_dim), lambda i, k: (k, 0)),
            ],
            # lane-dense output tile, revisited (accumulated) across the vocab axis
            out_specs=pl.BlockSpec((tile, emb_dim), lambda i, k: (i, 0)),
        ),
        compiler_params=pltpu.CompilerParams(
            dimension_semantics=("parallel", "arbitrary"),
            vmem_limit_bytes=vmem_limit,
        ),
    )(ids2d, tbl)

    return out[:n].reshape(orig_shape + (emb_dim,))


# ---------------------------- demo / correctness check ----------------------------
if __name__ == "__main__":
    key = jax.random.PRNGKey(0)
    k_emb, k_tok = jax.random.split(key)

    VOCAB, EMB_DIM = 512, 128        # E = 128 -> lane-dense output blocks
    BATCH, SEQ = 4, 160              # 640 tokens -> two 512-row token tiles (second is padded)

    table = 0.1 * jax.random.normal(k_emb, (VOCAB, EMB_DIM), jnp.float32)
    tokens = jax.random.randint(k_tok, (BATCH, SEQ), 0, VOCAB, dtype=jnp.int32)

    # pure-JAX reference: embedding lookup * sqrt(embedding_dim)
    ref = table[tokens] * math.sqrt(EMB_DIM)

    # 1) f32 table, whole vocab resident (single vocab tile).
    out = jax.block_until_ready(token_embedding(tokens, table))
    assert out.shape == (BATCH, SEQ, EMB_DIM) and out.dtype == jnp.float32
    assert jnp.allclose(out, ref, atol=1e-3, rtol=1e-3), "f32 single-vocab-tile path mismatch"

    # 2) f32 table, vocab-tiled reduction axis (4 vocab tiles of 128 rows).
    out_vt = jax.block_until_ready(token_embedding(tokens, table, vocab_tile=128))
    assert jnp.allclose(out_vt, ref, atol=1e-3, rtol=1e-3), "vocab-tiled reduction path mismatch"

    # 3) bf16 table: MXU-native bf16 dot, bf16 output (nn.Embedding dtype contract).
    table_bf16 = table.astype(jnp.bfloat16)
    out_bf16 = jax.block_until_ready(token_embedding(tokens, table_bf16))
    ref_bf16 = table_bf16[tokens].astype(jnp.float32) * math.sqrt(EMB_DIM)
    assert out_bf16.dtype == jnp.bfloat16
    assert jnp.allclose(out_bf16.astype(jnp.float32), ref_bf16, atol=5e-2, rtol=5e-2), \
        "bf16 table path mismatch"

    print("KERNEL_OK")
</pallas_src>

<mosaic_0001>
module attributes {stable_mosaic.version = 11 : i64} {
  func.func @kernel(%arg0: i32, %arg1: i32, %arg2: memref<512x1xi32, #tpu.memory_space<vmem>>, %arg3: memref<512x128xf32, #tpu.memory_space<vmem>>, %arg4: memref<512x128xf32, #tpu.memory_space<vmem>>) attributes {dimension_semantics = [#tpu.dimension_semantics<parallel>, #tpu.dimension_semantics<arbitrary>], iteration_bounds = array<i64: 2, 1>, scalar_prefetch = 0 : i64, scratch_operands = 0 : i64, tpu.core_type = #tpu.core_type<tc>, window_params = [{transform_indices = @transform_0, window_bounds = array<i64: 512, 1>}, {transform_indices = @transform_1, window_bounds = array<i64: 512, 128>}, {transform_indices = @transform_2, window_bounds = array<i64: 512, 128>}]} {
    %c0 = arith.constant 0 : index
    %c0_0 = arith.constant 0 : index
    %0 = vector.load %arg2[%c0, %c0_0] : memref<512x1xi32, #tpu.memory_space<vmem>>, vector<512x1xi32>
    %1 = tpu.iota {dimensions = array<i32: 1>} : vector<512x512xi32>
    %2 = vector.broadcast %0 : vector<512x1xi32> to vector<512x512xi32>
    %3 = arith.cmpi eq, %2, %1 : vector<512x512xi32>
    %cst = arith.constant 11.3137083 : f32
    %cst_1 = arith.constant 0.000000e+00 : f32
    %4 = vector.broadcast %cst : f32 to vector<512x512xf32>
    %5 = vector.broadcast %cst_1 : f32 to vector<512x512xf32>
    %6 = arith.select %3, %4, %5 : vector<512x512xi1>, vector<512x512xf32>
    %c0_2 = arith.constant 0 : index
    %c0_3 = arith.constant 0 : index
    %7 = vector.load %arg3[%c0_2, %c0_3] : memref<512x128xf32, #tpu.memory_space<vmem>>, vector<512x128xf32>
    %cst_4 = arith.constant dense<0.000000e+00> : vector<512x128xf32>
    %8 = tpu.matmul %6, %7, %cst_4 {dimension_numbers = #tpu.dot_dimension_numbers<[1], [0], [0], [1], [0, 0, 1, 1], [], []>} : vector<512x512xf32>, vector<512x128xf32>, vector<512x128xf32> -> vector<512x128xf32>
    %c0_5 = arith.constant 0 : index
    %c0_6 = arith.constant 0 : index
    %9 = vector.load %arg4[%c0_5, %c0_6] : memref<512x128xf32, #tpu.memory_space<vmem>>, vector<512x128xf32>
    tpu.vector_store %arg4[%c0_5, %c0_6], %8 {strides = array<i32>} : memref<512x128xf32, #tpu.memory_space<vmem>>, vector<512x128xf32>,
    return
  }
  func.func @transform_0(%arg0: i32, %arg1: i32) -> (i32, i32) {
    %c0_i32 = arith.constant 0 : i32
    %c0_i32_0 = arith.constant 0 : i32
    return %arg0, %c0_i32 : i32, i32
  }
  func.func @transform_1(%arg0: i32, %arg1: i32) -> (i32, i32) {
    %c0_i32 = arith.constant 0 : i32
    %c0_i32_0 = arith.constant 0 : i32
    return %arg1, %c0_i32 : i32, i32
  }
  func.func @transform_2(%arg0: i32, %arg1: i32) -> (i32, i32) {
    %c0_i32 = arith.constant 0 : i32
    %c0_i32_0 = arith.constant 0 : i32
    return %arg0, %c0_i32 : i32, i32
  }
}

</mosaic_0001>

<bundles_post_ra>
// kernel: tpu_custom_call.1
= control target key start
LH: loop header
LB: loop body
LE: loop exit
PB: predicated region body
PF: predicated region fallthrough
CT: control target
= control target key end

     0   :  { %7 = vsyncpa [#allocation3], 0  ;;  %s3410_s0 = inlined_call_operand.vmem [shape: s32[1024,1], index: 0, kind: input, shape index: {}]   ;;  %s3411_s1 = inlined_call_operand.vmem [shape: f32[512,128], index: 1, kind: input, shape index: {}]   ;;  %s3412_s2 = inlined_call_operand.hbm [shape: f32[1024,128], index: 2, kind: output, shape index: {}]  }
   0x1   :  { %9 = vsyncpa [#allocation3 + $0x1], 0  ;;  %s2381_s9 = smov 0   ;;  %s2383_s10 = smov 0  }
   0x2   :  { %s2385_s11 = smov 0   ;;  %s2387_s12 = smov 0  }
   0x3   :  { %s2389_s13 = smov 0   ;;  %s2391_s14 = smov 0  }
   0x4 LB: > { %s1949_s15 = sadd.s32 4294967295, %s2358_s14   ;;  %s1950_s16 = sadd.s32 4294967294, %s2358_s14   ;;  %s2358_s14 = sphi %s2391_s14, %s15_s14   ;;  %s2354_s13 = sphi %s2389_s13, %s3419_s13   ;;  %s2350_s12 = sphi %s2387_s12, %s3418_s12   ;;  %s2346_s11 = sphi %s2385_s11, %s3417_s11   ;;  %s2342_s10 = sphi %s2383_s10, %s3416_s10   ;;  %s2338_s9 = sphi %s2381_s9, %s3415_s9  }
   0x5   : > { %s27_s17 = sadd.s32 1, %s2354_s13  ;;  %s86_s18 = sadd.s32 1, %s2346_s11 }
   0x6   : > { %p29_p0 = scmp.ge.s32.totalorder %s27_s17, 2  ;;  %p96_p1 = scmp.ne.s32.totalorder %s2346_s11, %s2342_s10 }
   0x7   : > { %p97_p2 = scmp.eq.s32.totalorder %s1949_s15, 1  ;;  %p102_p3 = scmp.ne.s32.totalorder %s2342_s10, %s2338_s9 }
   0x8   : > { %s3421_s17 = smov (%p29_p0, %s27_s17), 0  ;;  %p103_p5 = scmp.eq.s32.totalorder %s1950_s16, 1 }
   0x9   : > { %p2421_p4 = por %p97_p2, %p96_p1  ;;  %s83_s20 = ssub.s32 %s2354_s13, %s3421_s17 }
   0xa   : > { %p1954_p6 = scmp.ge.s32.totalorder %s2358_s14, 1  ;;  %p84_p7 = scmp.eq.s32.totalorder %s83_s20, 0 }
   0xb   : > { %p2428_p8 = por %p103_p5, %p102_p3  ;;  %p139_p9 = scmp.lt.s32.totalorder %s2358_s14, 3 }
   0xc   : > { %s2434_s22 = scalar_select %p84_p7, %s2346_s11, %s86_s18  }
   0xd   : > { %p140_p10 = pnand %p1954_p6, %p139_p9 }
   0xe   : > { %s1956_s23 = sshll.u32 (!%p140_p10), %s2350_s12, 6  ;;  %s2219_s16 = sshll.u32 (!%p140_p10), %s2350_s12, 13 }
   0xf   : > { %143 = sbr.rel (%p140_p10) target bundleno = 615 (0x267), region = 28  ;;  %p167_p11 = scmp.lt.s32.totalorder (!%p140_p10), %s1956_s23, 127 }
  0x10   : > { %s3358_s25 = scalar_lea.hbm (!%p140_p10), %s3412_s2, %s2219_s16  ;;  %s2363_s27 = smov (!%p140_p10), [#allocation2]  }
  0x11   : > { %s2286_s28 = sshll.u32 (!%p140_p10), %s2363_s27, 4  ;;  %s2287_s28 = int_to_ptr.vmem [resolvable:$false] %s2286_s28 }
  0x12   : > { %s2288_s29 = scalar_lea.vmem (!%p140_p10), %s2287_s28, 16384 }
  0x14   : > { %v967_v0 = vld [vmem:[%s3411_s1 + $0x78] sm:$0xff]  ;;  %v2360_v2 = vmov 0   ;;  %v2361_v3 = vmov 0.0   ;;  %v966_v4 = vld [vmem:[%s3411_s1 + $0x70] sm:$0xff]  ;;  %s3423_s23 = smov (!%p167_p11, %s1956_s23), 127  ;;  %v965_v6 = vld [vmem:[%s3411_s1 + $0x68] sm:$0xff] }
  0x15   : > { %v999_v1 = vld [vmem:[%s3411_s1 + $0x178] sm:$0xff]  ;;  %2281 = vset.pattern.permute.xlu1 %v2360_v2  ;;  %2280 = vset.pattern.permute.xlu0 %v2360_v2  ;;  %v998_v5 = vld [vmem:[%s3411_s1 + $0x170] sm:$0xff]  ;;  %v997_v7 = vld [vmem:[%s3411_s1 + $0x168] sm:$0xff]  ;;  %s1957_s8 = sshll.u32 %s3423_s23, 3 }
  0x16   : > { %1016 = vmatprep.subr.mxu0 %v2361_v3  ;;  %1401 = vmatprep.subr.mxu1 %v2361_v3  ;;  %s2462_s18 = scalar_lea.vmem %s3410_s0, %s1957_s8  ;;  %v964_v8 = vld [vmem:[%s3411_s1 + $0x60] sm:$0xff]  ;;  %v963_v14 = vld [vmem:[%s3411_s1 + $0x58] sm:$0xff]  ;;  %v962_v16 = vld [vmem:[%s3411_s1 + $0x50] sm:$0xff] }
  0x17   : > { %1017 = vmatpush1.msra.mxu0 %v967_v0  ;;  %1402 = vmatpush1.msra.mxu1 %v999_v1  ;;  %v181_v9 = vld [vmem:[%s2462_s18 + $0x10] sm:$0xff]  ;;  %v179_v10 = vld [vmem:[%s2462_s18] sm:$0xff]  ;;  %v182_v12 = vld [vmem:[%s2462_s18 + $0x18] sm:$0xff] }
  0x18   : > { %1018 = vmatprep.subr.mxu0 %v2361_v3  ;;  %1403 = vmatprep.subr.mxu1 %v2361_v3  ;;  %v996_v11 = vld [vmem:[%s3411_s1 + $0x160] sm:$0xff]  ;;  %v180_v13 = vld [vmem:[%s2462_s18 + $0x8] sm:$0xff]  ;;  %v995_v15 = vld [vmem:[%s3411_s1 + $0x158] sm:$0xff] }
  0x19   : > { %1019 = vmatpush1.msra.mxu0 %v966_v4  ;;  %1404 = vmatpush1.msra.mxu1 %v998_v5  ;;  %v994_v17 = vld [vmem:[%s3411_s1 + $0x150] sm:$0xff]  ;;  %v184_v18 = vld [vmem:[%s2462_s18 + $0x28] sm:$0xff]  ;;  %v183_v19 = vld [vmem:[%s2462_s18 + $0x20] sm:$0xff] }
  0x1a   : > { %1020 = vmatprep.subr.mxu0 %v2361_v3  ;;  %1405 = vmatprep.subr.mxu1 %v2361_v3  ;;  %v961_v20 = vld [vmem:[%s3411_s1 + $0x48] sm:$0xff]  ;;  %v186_v22 = vld [vmem:[%s2462_s18 + $0x38] sm:$0xff]  ;;  %v185_v23 = vld [vmem:[%s2462_s18 + $0x30] sm:$0xff] }
  0x1b   : > { %1021 = vmatpush1.msra.mxu0 %v965_v6  ;;  %1406 = vmatpush1.msra.mxu1 %v997_v7  ;;  %v993_v21 = vld [vmem:[%s3411_s1 + $0x148] sm:$0xff]  ;;  %v960_v24 = vld [vmem:[%s3411_s1 + $0x40] sm:$0xff]  ;;  %v959_v26 = vld [vmem:[%s3411_s1 + $0x38] sm:$0xff] }
  0x1c   : > { %255 = vperm.xlu1 %2281, %v181_v9   ;;  %249 = vperm.xlu0 %2280, %v179_v10   ;;  %v992_v25 = vld [vmem:[%s3411_s1 + $0x140] sm:$0xff]  ;;  %v991_v27 = vld [vmem:[%s3411_s1 + $0x138] sm:$0xff]  ;;  %v188_v28 = vld [vmem:[%s2462_s18 + $0x48] sm:$0xff] }
  0x1d   : > { %1022 = vmatprep.subr.mxu0 %v2361_v3  ;;  %1407 = vmatprep.subr.mxu1 %v2361_v3  ;;  %v187_v29 = vld [vmem:[%s2462_s18 + $0x40] sm:$0xff]  ;;  %v958_v30 = vld [vmem:[%s3411_s1 + $0x30] sm:$0xff]  ;;  %v190_v32 = vld [vmem:[%s2462_s18 + $0x58] sm:$0xff] }
  0x1e   : > { %1023 = vmatpush1.msra.mxu0 %v964_v8  ;;  %1408 = vmatpush1.msra.mxu1 %v996_v11  ;;  %v990_v31 = vld [vmem:[%s3411_s1 + $0x130] sm:$0xff]  ;;  %v957_v34 = vld [vmem:[%s3411_s1 + $0x28] sm:$0xff]  ;;  %v956_v36 = vld [vmem:[%s3411_s1 + $0x20] sm:$0xff] }
  0x1f   : > { %1024 = vmatprep.subr.mxu0 %v2361_v3  ;;  %1409 = vmatprep.subr.mxu1 %v2361_v3  ;;  %v189_v33 = vld [vmem:[%s2462_s18 + $0x50] sm:$0xff]  ;;  %v989_v35 = vld [vmem:[%s3411_s1 + $0x128] sm:$0xff]  ;;  %v988_v37 = vld [vmem:[%s3411_s1 + $0x120] sm:$0xff] }
  0x20   : > { %258 = vperm.xlu1 %2281, %v182_v12   ;;  %252 = vperm.xlu0 %2280, %v180_v13   ;;  %v192_v38 = vld [vmem:[%s2462_s18 + $0x68] sm:$0xff]  ;;  %v191_v39 = vld [vmem:[%s2462_s18 + $0x60] sm:$0xff]  ;;  %v955_v40 = vld [vmem:[%s3411_s1 + $0x18] sm:$0xff] }
  0x21   : > { %1025 = vmatpush1.msra.mxu0 %v963_v14  ;;  %1410 = vmatpush1.msra.mxu1 %v995_v15  ;;  %v987_v41 = vld [vmem:[%s3411_s1 + $0x118] sm:$0xff]  ;;  %v193_v43 = vld [vmem:[%s2462_s18 + $0x70] sm:$0xff]  ;;  %v953_v46 = vld [vmem:[%s3411_s1 + $0x8] sm:$0xff] }
  0x22   : > { %1026 = vmatprep.subr.mxu0 %v2361_v3  ;;  %1411 = vmatprep.subr.mxu1 %v2361_v3  ;;  %v194_v42 = vld [vmem:[%s2462_s18 + $0x78] sm:$0xff]  ;;  %v954_v44 = vld [vmem:[%s3411_s1 + $0x10] sm:$0xff]  ;;  %v985_v47 = vld [vmem:[%s3411_s1 + $0x108] sm:$0xff] }
  0x23   : > { %1027 = vmatpush1.msra.mxu0 %v962_v16  ;;  %1412 = vmatpush1.msra.mxu1 %v994_v17  ;;  %v986_v45 = vld [vmem:[%s3411_s1 + $0x110] sm:$0xff]  ;;  %v196_v48 = vld [vmem:[%s2462_s18 + $0x88] sm:$0xff]  ;;  %v195_v49 = vld [vmem:[%s2462_s18 + $0x80] sm:$0xff] }
  0x24   : > { %264 = vperm.xlu1 %2281, %v184_v18   ;;  %261 = vperm.xlu0 %2280, %v183_v19   ;;  %v952_v50 = vld [vmem:[%s3411_s1] sm:$0xff]  ;;  %v198_v52 = vld [vmem:[%s2462_s18 + $0x98] sm:$0xff]  ;;  %v197_v53 = vld [vmem:[%s2462_s18 + $0x90] sm:$0xff] }
  0x25   : > { %1028 = vmatprep.subr.mxu0 %v2361_v3  ;;  %1413 = vmatprep.subr.mxu1 %v2361_v3  ;;  %v984_v51 = vld [vmem:[%s3411_s1 + $0x100] sm:$0xff]  ;;  %v983_v54 = vld [vmem:[%s3411_s1 + $0xf8] sm:$0xff]  ;;  %v982_v56 = vld [vmem:[%s3411_s1 + $0xf0] sm:$0xff] }
  0x26   : > { %1029 = vmatpush1.msra.mxu0 %v961_v20  ;;  %1414 = vmatpush1.msra.mxu1 %v993_v21  ;;  %v1015_v55 = vld [vmem:[%s3411_s1 + $0x1f8] sm:$0xff]  ;;  %v1014_v57 = vld [vmem:[%s3411_s1 + $0x1f0] sm:$0xff]  ;;  %v200_v58 = vld [vmem:[%s2462_s18 + $0xa8] sm:$0xff] }
  0x27   : > { %1030 = vmatprep.subr.mxu0 %v2361_v3  ;;  %1415 = vmatprep.subr.mxu1 %v2361_v3  ;;  %v199_v59 = vld [vmem:[%s2462_s18 + $0xa0] sm:$0xff]  ;;  %v981_v60 = vld [vmem:[%s3411_s1 + $0xe8] sm:$0xff]  ;;  %v202_v62 = vld [vmem:[%s2462_s18 + $0xb8] sm:$0xff] }
  0x28   : > { %270 = vperm.xlu1 %2281, %v186_v22   ;;  %267 = vperm.xlu0 %2280, %v185_v23   ;;  %v1013_v61 = vld [vmem:[%s3411_s1 + $0x1e8] sm:$0xff]  ;;  %v201_v63 = vld [vmem:[%s2462_s18 + $0xb0] sm:$0xff]  ;;  %v980_v0 = vld [vmem:[%s3411_s1 + $0xe0] sm:$0xff] }
  0x29   : > { %1031 = vmatpush1.msra.mxu0 %v960_v24  ;;  %1416 = vmatpush1.msra.mxu1 %v992_v25  ;;  %v1012_v1 = vld [vmem:[%s3411_s1 + $0x1e0] sm:$0xff]  ;;  %v979_v2 = vld [vmem:[%s3411_s1 + $0xd8] sm:$0xff]  ;;  %v204_v5 = vld [vmem:[%s2462_s18 + $0xc8] sm:$0xff] }
  0x2a   : > { %1032 = vmatprep.subr.mxu0 %v2361_v3  ;;  %1417 = vmatprep.subr.mxu1 %v2361_v3  ;;  %v1011_v4 = vld [vmem:[%s3411_s1 + $0x1d8] sm:$0xff]  ;;  %v203_v6 = vld [vmem:[%s2462_s18 + $0xc0] sm:$0xff]  ;;  %v978_v7 = vld [vmem:[%s3411_s1 + $0xd0] sm:$0xff] }
  0x2b   : > { %1033 = vmatpush1.msra.mxu0 %v959_v26  ;;  %1418 = vmatpush1.msra.mxu1 %v991_v27  ;;  %v1010_v8 = vld [vmem:[%s3411_s1 + $0x1d0] sm:$0xff]  ;;  %v206_v9 = vld [vmem:[%s2462_s18 + $0xd8] sm:$0xff]  ;;  %v977_v11 = vld [vmem:[%s3411_s1 + $0xc8] sm:$0xff] }
  0x2c   : > { %276 = vperm.xlu1 %2281, %v188_v28   ;;  %273 = vperm.xlu0 %2280, %v187_v29   ;;  %v205_v10 = vld [vmem:[%s2462_s18 + $0xd0] sm:$0xff]  ;;  %v1009_v12 = vld [vmem:[%s3411_s1 + $0x1c8] sm:$0xff]  ;;  %v976_v13 = vld [vmem:[%s3411_s1 + $0xc0] sm:$0xff] }
  0x2d   : > { %1034 = vmatprep.subr.mxu0 %v2361_v3  ;;  %1419 = vmatprep.subr.mxu1 %v2361_v3  ;;  %v1008_v14 = vld [vmem:[%s3411_s1 + $0x1c0] sm:$0xff]  ;;  %v208_v15 = vld [vmem:[%s2462_s18 + $0xe8] sm:$0xff]  ;;  %v975_v17 = vld [vmem:[%s3411_s1 + $0xb8] sm:$0xff] }
  0x2e   : > { %1035 = vmatpush1.msra.mxu0 %v958_v30  ;;  %1420 = vmatpush1.msra.mxu1 %v990_v31  ;;  %v207_v16 = vld [vmem:[%s2462_s18 + $0xe0] sm:$0xff]  ;;  %v1007_v18 = vld [vmem:[%s3411_s1 + $0x1b8] sm:$0xff]  ;;  %v209_v20 = vld [vmem:[%s2462_s18 + $0xf0] sm:$0xff] }
  0x2f   : > { %1036 = vmatprep.subr.mxu0 %v2361_v3  ;;  %1421 = vmatprep.subr.mxu1 %v2361_v3  ;;  %v210_v19 = vld [vmem:[%s2462_s18 + $0xf8] sm:$0xff]  ;;  %v974_v21 = vld [vmem:[%s3411_s1 + $0xb0] sm:$0xff]  ;;  %v973_v23 = vld [vmem:[%s3411_s1 + $0xa8] sm:$0xff] }
  0x30   : > { %282 = vperm.xlu1 %2281, %v190_v32   ;;  %279 = vperm.xlu0 %2280, %v189_v33   ;;  %v1006_v22 = vld [vmem:[%s3411_s1 + $0x1b0] sm:$0xff]  ;;  %v1005_v24 = vld [vmem:[%s3411_s1 + $0x1a8] sm:$0xff]  ;;  %v211_v26 = vld [vmem:[%s2462_s18 + $0x100] sm:$0xff] }
  0x31   : > { %1037 = vmatpush1.msra.mxu0 %v957_v34  ;;  %1422 = vmatpush1.msra.mxu1 %v989_v35  ;;  %v212_v25 = vld [vmem:[%s2462_s18 + $0x108] sm:$0xff]  ;;  %v972_v27 = vld [vmem:[%s3411_s1 + $0xa0] sm:$0xff]  ;;  %v214_v29 = vld [vmem:[%s2462_s18 + $0x118] sm:$0xff] }
  0x32   : > { %1038 = vmatprep.subr.mxu0 %v2361_v3  ;;  %1423 = vmatprep.subr.mxu1 %v2361_v3  ;;  %v1004_v28 = vld [vmem:[%s3411_s1 + $0x1a0] sm:$0xff]  ;;  %v213_v30 = vld [vmem:[%s2462_s18 + $0x110] sm:$0xff]  ;;  %v971_v31 = vld [vmem:[%s3411_s1 + $0x98] sm:$0xff] }
  0x33   : > { %1039 = vmatpush1.msra.mxu0 %v956_v36  ;;  %1424 = vmatpush1.msra.mxu1 %v988_v37  ;;  %v1003_v32 = vld [vmem:[%s3411_s1 + $0x198] sm:$0xff]  ;;  %v970_v33 = vld [vmem:[%s3411_s1 + $0x90] sm:$0xff]  ;;  %v216_v35 = vld [vmem:[%s2462_s18 + $0x128] sm:$0xff] }
  0x34   : > { %288 = vperm.xlu1 %2281, %v192_v38   ;;  %285 = vperm.xlu0 %2280, %v191_v39   ;;  %v1002_v34 = vld [vmem:[%s3411_s1 + $0x190] sm:$0xff]  ;;  %v215_v36 = vld [vmem:[%s2462_s18 + $0x120] sm:$0xff]  ;;  %v969_v37 = vld [vmem:[%s3411_s1 + $0x88] sm:$0xff] }
  0x35   : > { %1040 = vmatprep.subr.mxu0 %v2361_v3  ;;  %1425 = vmatprep.subr.mxu1 %v2361_v3  ;;  %v1001_v38 = vld [vmem:[%s3411_s1 + $0x188] sm:$0xff]  ;;  %v218_v39 = vld [vmem:[%s2462_s18 + $0x138] sm:$0xff] }
  0x36   : > { %1041 = vmatpush1.msra.mxu0 %v955_v40  ;;  %1426 = vmatpush1.msra.mxu1 %v987_v41  ;;  %v217_v40 = vld [vmem:[%s2462_s18 + $0x130] sm:$0xff]  ;;  %v968_v41 = vld [vmem:[%s3411_s1 + $0x80] sm:$0xff] }
  0x37   : > { %1042 = vmatprep.subr.mxu0 %v2361_v3  ;;  %1427 = vmatprep.subr.mxu1 %v2361_v3 }
  0x38   : > { %294 = vperm.xlu1 %2281, %v194_v42   ;;  %291 = vperm.xlu0 %2280, %v193_v43   ;;  %v1000_v42 = vld [vmem:[%s3411_s1 + $0x180] sm:$0xff]  ;;  %v220_v43 = vld [vmem:[%s2462_s18 + $0x148] sm:$0xff] }
  0x39   : > { %1043 = vmatpush1.msra.mxu0 %v954_v44  ;;  %1428 = vmatpush1.msra.mxu1 %v986_v45  ;;  %v219_v44 = vld [vmem:[%s2462_s18 + $0x140] sm:$0xff]  ;;  %v222_v45 = vld [vmem:[%s2462_s18 + $0x158] sm:$0xff] }
  0x3a   : > { %1044 = vmatprep.subr.mxu0 %v2361_v3  ;;  %1429 = vmatprep.subr.mxu1 %v2361_v3 }
  0x3b   : > { %1045 = vmatpush1.msra.mxu0 %v953_v46  ;;  %1430 = vmatpush1.msra.mxu1 %v985_v47  ;;  %v221_v46 = vld [vmem:[%s2462_s18 + $0x150] sm:$0xff]  ;;  %v224_v47 = vld [vmem:[%s2462_s18 + $0x168] sm:$0xff] }
  0x3c   : > { %300 = vperm.xlu1 %2281, %v196_v48   ;;  %297 = vperm.xlu0 %2280, %v195_v49   ;;  %v226_v48 = vld [vmem:[%s2462_s18 + $0x178] sm:$0xff]  ;;  %v225_v49 = vld [vmem:[%s2462_s18 + $0x170] sm:$0xff] }
  0x3d   : > { %1046 = vmatprep.subr.mxu0 %v2361_v3  ;;  %1431 = vmatprep.subr.mxu1 %v2361_v3 }
  0x3e   : > { %1047 = vmatpush1.msra.mxu0 %v952_v50  ;;  %1432 = vmatpush1.msra.mxu1 %v984_v51  ;;  %v228_v50 = vld [vmem:[%s2462_s18 + $0x188] sm:$0xff]  ;;  %v227_v51 = vld [vmem:[%s2462_s18 + $0x180] sm:$0xff] }
  0x3f   : > { %1048 = vmatprep.subr.mxu0 %v2361_v3  ;;  %1433 = vmatprep.subr.mxu1 %v2361_v3 }
  0x40   : > { %306 = vperm.xlu1 %2281, %v198_v52   ;;  %303 = vperm.xlu0 %2280, %v197_v53   ;;  %v230_v52 = vld [vmem:[%s2462_s18 + $0x198] sm:$0xff]  ;;  %v229_v53 = vld [vmem:[%s2462_s18 + $0x190] sm:$0xff] }
  0x41   : > { %1049 = vmatpush2.msra.mxu0 %v983_v54  ;;  %1434 = vmatpush2.msra.mxu1 %v1015_v55  ;;  %v232_v54 = vld [vmem:[%s2462_s18 + $0x1a8] sm:$0xff]  ;;  %v231_v55 = vld [vmem:[%s2462_s18 + $0x1a0] sm:$0xff] }
  0x42   : > { %1050 = vmatprep.subr.mxu0 %v2361_v3  ;;  %1435 = vmatprep.subr.mxu1 %v2361_v3 }
  0x43   : > { %1051 = vmatpush2.msra.mxu0 %v982_v56  ;;  %1436 = vmatpush2.msra.mxu1 %v1014_v57  ;;  %v234_v56 = vld [vmem:[%s2462_s18 + $0x1b8] sm:$0xff]  ;;  %v233_v57 = vld [vmem:[%s2462_s18 + $0x1b0] sm:$0xff] }
  0x44   : > { %312 = vperm.xlu1 %2281, %v200_v58   ;;  %309 = vperm.xlu0 %2280, %v199_v59   ;;  %v236_v58 = vld [vmem:[%s2462_s18 + $0x1c8] sm:$0xff]  ;;  %v235_v59 = vld [vmem:[%s2462_s18 + $0x1c0] sm:$0xff] }
  0x45   : > { %1052 = vmatprep.subr.mxu0 %v2361_v3  ;;  %1437 = vmatprep.subr.mxu1 %v2361_v3 }
  0x46   : > { %1053 = vmatpush2.msra.mxu0 %v981_v60  ;;  %1438 = vmatpush2.msra.mxu1 %v1013_v61  ;;  %v243_v60 = vlaneseq  ;;  %v238_v61 = vld [vmem:[%s2462_s18 + $0x1d8] sm:$0xff] }
  0x47   : > { %1054 = vmatprep.subr.mxu0 %v2361_v3  ;;  %1439 = vmatprep.subr.mxu1 %v2361_v3 }
  0x48   : > { %318 = vperm.xlu1 %2281, %v202_v62   ;;  %315 = vperm.xlu0 %2280, %v201_v63   ;;  %v237_v62 = vld [vmem:[%s2462_s18 + $0x1d0] sm:$0xff]  ;;  %v2758_v63 = vand.u32 127, %v243_v60 }
  0x49   : > { %1055 = vmatpush2.msra.mxu0 %v980_v0  ;;  %1440 = vmatpush2.msra.mxu1 %v1012_v1  ;;  %v240_v0 = vld [vmem:[%s2462_s18 + $0x1e8] sm:$0xff]  ;;  %v239_v1 = vld [vmem:[%s2462_s18 + $0x1e0] sm:$0xff] }
  0x4a   : > { %1056 = vmatprep.subr.mxu0 %v2361_v3  ;;  %1441 = vmatprep.subr.mxu1 %v2361_v3 }
  0x4b   : > { %1057 = vmatpush2.msra.mxu0 %v979_v2  ;;  %1442 = vmatpush2.msra.mxu1 %v1011_v4  ;;  %v2763_v2 = vadd.s32 128, %v2758_v63  ;;  %v2766_v4 = vadd.s32 384, %v2758_v63 }
  0x4c   : > { %324 = vperm.xlu1 %2281, %v204_v5   ;;  %321 = vperm.xlu0 %2280, %v203_v6   ;;  %v242_v5 = vld [vmem:[%s2462_s18 + $0x1f8] sm:$0xff]  ;;  %v241_v6 = vld [vmem:[%s2462_s18 + $0x1f0] sm:$0xff] }
  0x4d   : > { %1058 = vmatprep.subr.mxu0 %v2361_v3  ;;  %1443 = vmatprep.subr.mxu1 %v2361_v3 }
  0x4e   : > { %1059 = vmatpush2.msra.mxu0 %v978_v7  ;;  %1444 = vmatpush2.msra.mxu1 %v1010_v8  ;;  %v2771_v7 = vadd.s32 256, %v2758_v63 }
  0x4f   : > { %1060 = vmatprep.subr.mxu0 %v2361_v3  ;;  %1445 = vmatprep.subr.mxu1 %v2361_v3 }
  0x50   : > { %330 = vperm.xlu1 %2281, %v206_v9   ;;  %327 = vperm.xlu0 %2280, %v205_v10   ;;  %v2362_v9 = vmov 11.313708  }
  0x51   : > { %1061 = vmatpush2.msra.mxu0 %v977_v11  ;;  %1446 = vmatpush2.msra.mxu1 %v1009_v12 }
  0x52   : > { %1062 = vmatprep.subr.mxu0 %v2361_v3  ;;  %1447 = vmatprep.subr.mxu1 %v2361_v3 }
  0x53   : > { %1063 = vmatpush2.msra.mxu0 %v976_v13  ;;  %1448 = vmatpush2.msra.mxu1 %v1008_v14 }
  0x54   : > { %336 = vperm.xlu1 %2281, %v208_v15   ;;  %333 = vperm.xlu0 %2280, %v207_v16  }
  0x55   : > { %1064 = vmatprep.subr.mxu0 %v2361_v3  ;;  %1449 = vmatprep.subr.mxu1 %v2361_v3 }
  0x56   : > { %1065 = vmatpush2.msra.mxu0 %v975_v17  ;;  %1450 = vmatpush2.msra.mxu1 %v1007_v18 }
  0x57   : > { %1066 = vmatprep.subr.mxu0 %v2361_v3  ;;  %1451 = vmatprep.subr.mxu1 %v2361_v3 }
  0x58   : > { %342 = vperm.xlu1 %2281, %v210_v19   ;;  %339 = vperm.xlu0 %2280, %v209_v20  }
  0x59   : > { %1067 = vmatpush2.msra.mxu0 %v974_v21  ;;  %1452 = vmatpush2.msra.mxu1 %v1006_v22 }
  0x5a   : > { %1068 = vmatprep.subr.mxu0 %v2361_v3  ;;  %1453 = vmatprep.subr.mxu1 %v2361_v3 }
  0x5b   : > { %1069 = vmatpush2.msra.mxu0 %v973_v23  ;;  %1454 = vmatpush2.msra.mxu1 %v1005_v24 }
  0x5c   : > { %348 = vperm.xlu1 %2281, %v212_v25   ;;  %345 = vperm.xlu0 %2280, %v211_v26  }
  0x5d   : > { %1070 = vmatprep.subr.mxu0 %v2361_v3  ;;  %1455 = vmatprep.subr.mxu1 %v2361_v3 }
  0x5e   : > { %1071 = vmatpush2.msra.mxu0 %v972_v27  ;;  %1456 = vmatpush2.msra.mxu1 %v1004_v28 }
  0x5f   : > { %1072 = vmatprep.subr.mxu0 %v2361_v3  ;;  %1457 = vmatprep.subr.mxu1 %v2361_v3 }
  0x60   : > { %354 = vperm.xlu1 %2281, %v214_v29   ;;  %351 = vperm.xlu0 %2280, %v213_v30  }
  0x61   : > { %1073 = vmatpush2.msra.mxu0 %v971_v31  ;;  %1458 = vmatpush2.msra.mxu1 %v1003_v32 }
  0x62   : > { %1074 = vmatprep.subr.mxu0 %v2361_v3  ;;  %1459 = vmatprep.subr.mxu1 %v2361_v3 }
  0x63   : > { %1075 = vmatpush2.msra.mxu0 %v970_v33  ;;  %1460 = vmatpush2.msra.mxu1 %v1002_v34 }
  0x64   : > { %360 = vperm.xlu1 %2281, %v216_v35   ;;  %357 = vperm.xlu0 %2280, %v215_v36  }
  0x65   : > { %1076 = vmatprep.subr.mxu0 %v2361_v3  ;;  %1461 = vmatprep.subr.mxu1 %v2361_v3 }
  0x66   : > { %1077 = vmatpush2.msra.mxu0 %v969_v37  ;;  %1462 = vmatpush2.msra.mxu1 %v1001_v38 }
  0x67   : > { %1078 = vmatprep.subr.mxu0 %v2361_v3  ;;  %1463 = vmatprep.subr.mxu1 %v2361_v3  ;;  %v223_v3 = vld [vmem:[%s2462_s18 + $0x160] sm:$0xff]  ;;  %s163_s18 = sand.u32 1, %s2342_s10  }
  0x68   : > { %366 = vperm.xlu1 %2281, %v218_v39   ;;  %363 = vperm.xlu0 %2280, %v217_v40   ;;  %s1955_s8 = sshll.u32 %s163_s18, 9  ;;  %s3365_s12 = scalar_lea.sflag [#allocation3], %s163_s18 }
  0x69   : > { %1079 = vmatpush2.msra.mxu0 %v968_v41  ;;  %1464 = vmatpush2.msra.mxu1 %v1000_v42  ;;  %s3172_s15 = scalar_lea.vmem [#allocation2], %s1955_s8 }
  0x6a   : > { %s1864_s20 = sshll.u32 %s3172_s15, 4  ;;  %s3360_s20 = int_to_ptr.vmem [resolvable:$true] %s1864_s20 }
  0x6b   : > { %s2282_s26 = scalar_lea.vmem %s3360_s20, 8192  ;;  %p2289_p1 = scmp.lt.s32.totalorder %s3360_s20, %s2287_s28 }
  0x6c   : > { %372 = vperm.xlu1 %2281, %v220_v43   ;;  %369 = vperm.xlu0 %2280, %v219_v44   ;;  %p2283_p12 = scmp.ne.s32.totalorder %s3360_s20, %s2282_s26  ;;  %p2290_p2 = scmp.lt.s32.totalorder %s2288_s29, %s2282_s26 }
  0x6e   : > { %p2284_p13 = pnand %p2283_p12, %p2421_p4  ;;  %p2291_p3 = por %p2290_p2, %p2289_p1 }
  0x70   : > { %378 = vperm.xlu1 %2281, %v222_v45   ;;  %375 = vperm.xlu0 %2280, %v221_v46   ;;  %p2285_p0 = pneg %p2284_p13 }
  0x72   : > { %p2292_p5 = pnand %p2291_p3, %p2285_p0 }
  0x74   : > { %384 = vperm.xlu1 %2281, %v224_v47   ;;  %381 = vperm.xlu0 %2280, %v223_v3  }
  0x78   : > { %390 = vperm.xlu1 %2281, %v226_v48   ;;  %387 = vperm.xlu0 %2280, %v225_v49  }
  0x7c   : > { %396 = vperm.xlu1 %2281, %v228_v50   ;;  %393 = vperm.xlu0 %2280, %v227_v51  }
  0x80   : > { %402 = vperm.xlu1 %2281, %v230_v52   ;;  %399 = vperm.xlu0 %2280, %v229_v53  }
  0x84   : > { %408 = vperm.xlu1 %2281, %v232_v54   ;;  %405 = vperm.xlu0 %2280, %v231_v55  }
  0x88   : > { %414 = vperm.xlu1 %2281, %v234_v56   ;;  %411 = vperm.xlu0 %2280, %v233_v57  }
  0x8c   : > { %420 = vperm.xlu1 %2281, %v236_v58   ;;  %417 = vperm.xlu0 %2280, %v235_v59  }
  0x90   : > { %426 = vperm.xlu1 %2281, %v238_v61   ;;  %423 = vperm.xlu0 %2280, %v237_v62  }
  0x94   : > { %432 = vperm.xlu1 %2281, %v240_v0   ;;  %429 = vperm.xlu0 %2280, %v239_v1  }
  0x97   : > { %v250_v8 = vpop.permute.xlu0 %249  ;;  %v256_v10 = vpop.permute.xlu1 %255 }
  0x98   : > { %438 = vperm.xlu1 %2281, %v242_v5   ;;  %435 = vperm.xlu0 %2280, %v241_v6   ;;  %vm441_vm0 = vcmp.eq.s32.totalorder %v250_v8, %v2763_v2  ;;  %vm443_vm1 = vcmp.eq.s32.totalorder %v250_v8, %v2766_v4  ;;  %vm440_vm2 = vcmp.eq.s32.totalorder %v250_v8, %v2758_v63 }
  0x99   : > { %1958 = vmatprep.mubr.msk.f32.mxu0 %vm441_vm0, %v2362_v9  ;;  %2086 = vmatprep.mubr.msk.f32.mxu1 %vm443_vm1, %v2362_v9  ;;  %vm442_vm3 = vcmp.eq.s32.totalorder %v250_v8, %v2771_v7  ;;  %vm449_vm4 = vcmp.eq.s32.totalorder %v256_v10, %v2763_v2  ;;  %vm451_vm5 = vcmp.eq.s32.totalorder %v256_v10, %v2766_v4 }
  0x9a   : > { %1959 = vmatmul.mubr.msk.f32.vlgmr.msra.gmra.mxu0 %vm440_vm2, %v2362_v9  ;;  %2087 = vmatmul.mubr.msk.f32.vlgmr.msra.gmra.mxu1 %vm442_vm3, %v2362_v9  ;;  %vm448_vm10 = vcmp.eq.s32.totalorder %v256_v10, %v2758_v63  ;;  %vm450_vm11 = vcmp.eq.s32.totalorder %v256_v10, %v2771_v7 }
  0x9b   : > { %v253_v11 = vpop.permute.xlu0 %252  ;;  %v259_v12 = vpop.permute.xlu1 %258 }
  0x9c   : > { %vm445_vm6 = vcmp.eq.s32.totalorder %v253_v11, %v2763_v2  ;;  %vm447_vm7 = vcmp.eq.s32.totalorder %v253_v11, %v2766_v4  ;;  %vm444_vm8 = vcmp.eq.s32.totalorder %v253_v11, %v2758_v63  ;;  %vm446_vm9 = vcmp.eq.s32.totalorder %v253_v11, %v2771_v7 }
  0x9d   : > { %1960 = vmatprep.mubr.msk.f32.mxu0 %vm445_vm6, %v2362_v9  ;;  %2088 = vmatprep.mubr.msk.f32.mxu1 %vm447_vm7, %v2362_v9  ;;  %vm453_vm12 = vcmp.eq.s32.totalorder %v259_v12, %v2763_v2  ;;  %vm455_vm13 = vcmp.eq.s32.totalorder %v259_v12, %v2766_v4  ;;  %vm452_vm14 = vcmp.eq.s32.totalorder %v259_v12, %v2758_v63 }
  0x9e   : > { %1961 = vmatmul.mubr.msk.f32.gmra.mxu0 %vm444_vm8, %v2362_v9  ;;  %2089 = vmatmul.mubr.msk.f32.gmra.mxu1 %vm446_vm9, %v2362_v9  ;;  %vm454_vm15 = vcmp.eq.s32.totalorder %v259_v12, %v2771_v7 }
  0x9f   : > { %1962 = vmatprep.mubr.msk.f32.mxu0 %vm449_vm4, %v2362_v9  ;;  %2090 = vmatprep.mubr.msk.f32.mxu1 %vm451_vm5, %v2362_v9  ;;  %v262_v13 = vpop.permute.xlu0 %261  ;;  %v265_v14 = vpop.permute.xlu1 %264 }
  0xa0   : > { %vm457_vm0 = vcmp.eq.s32.totalorder %v262_v13, %v2763_v2  ;;  %vm459_vm1 = vcmp.eq.s32.totalorder %v262_v13, %v2766_v4  ;;  %vm456_vm2 = vcmp.eq.s32.totalorder %v262_v13, %v2758_v63  ;;  %vm458_vm3 = vcmp.eq.s32.totalorder %v262_v13, %v2771_v7 }
  0xa1   : > { %vm461_vm4 = vcmp.eq.s32.totalorder %v265_v14, %v2763_v2  ;;  %vm463_vm5 = vcmp.eq.s32.totalorder %v265_v14, %v2766_v4  ;;  %vm460_vm6 = vcmp.eq.s32.totalorder %v265_v14, %v2758_v63  ;;  %vm462_vm7 = vcmp.eq.s32.totalorder %v265_v14, %v2771_v7 }
  0xa2   : > { %1963 = vmatmul.mubr.msk.f32.gmra.mxu0 %vm448_vm10, %v2362_v9  ;;  %2091 = vmatmul.mubr.msk.f32.gmra.mxu1 %vm450_vm11, %v2362_v9 }
  0xa3   : > { %1964 = vmatprep.mubr.msk.f32.mxu0 %vm453_vm12, %v2362_v9  ;;  %2092 = vmatprep.mubr.msk.f32.mxu1 %vm455_vm13, %v2362_v9  ;;  %v268_v15 = vpop.permute.xlu0 %267  ;;  %v271_v16 = vpop.permute.xlu1 %270 }
  0xa4   : > { %vm465_vm8 = vcmp.eq.s32.totalorder %v268_v15, %v2763_v2  ;;  %vm467_vm9 = vcmp.eq.s32.totalorder %v268_v15, %v2766_v4  ;;  %vm464_vm10 = vcmp.eq.s32.totalorder %v268_v15, %v2758_v63  ;;  %vm466_vm11 = vcmp.eq.s32.totalorder %v268_v15, %v2771_v7 }
  0xa5   : > { %vm469_vm12 = vcmp.eq.s32.totalorder %v271_v16, %v2763_v2  ;;  %vm471_vm13 = vcmp.eq.s32.totalorder %v271_v16, %v2766_v4 }
  0xa6   : > { %1965 = vmatmul.mubr.msk.f32.gmra.mxu0 %vm452_vm14, %v2362_v9  ;;  %2093 = vmatmul.mubr.msk.f32.gmra.mxu1 %vm454_vm15, %v2362_v9  ;;  %vm468_vm14 = vcmp.eq.s32.totalorder %v271_v16, %v2758_v63  ;;  %vm470_vm15 = vcmp.eq.s32.totalorder %v271_v16, %v2771_v7 }
  0xa7   : > { %1966 = vmatprep.mubr.msk.f32.mxu0 %vm457_vm0, %v2362_v9  ;;  %2094 = vmatprep.mubr.msk.f32.mxu1 %vm459_vm1, %v2362_v9  ;;  %v274_v17 = vpop.permute.xlu0 %273  ;;  %v277_v18 = vpop.permute.xlu1 %276 }
  0xa8   : > { %vm473_vm0 = vcmp.eq.s32.totalorder %v274_v17, %v2763_v2  ;;  %vm475_vm1 = vcmp.eq.s32.totalorder %v274_v17, %v2766_v4 }
  0xaa   : > { %1967 = vmatmul.mubr.msk.f32.gmra.mxu0 %vm456_vm2, %v2362_v9  ;;  %2095 = vmatmul.mubr.msk.f32.gmra.mxu1 %vm458_vm3, %v2362_v9  ;;  %vm472_vm2 = vcmp.eq.s32.totalorder %v274_v17, %v2758_v63  ;;  %vm474_vm3 = vcmp.eq.s32.totalorder %v274_v17, %v2771_v7 }
  0xab   : > { %1968 = vmatprep.mubr.msk.f32.mxu0 %vm461_vm4, %v2362_v9  ;;  %2096 = vmatprep.mubr.msk.f32.mxu1 %vm463_vm5, %v2362_v9  ;;  %vm477_vm4 = vcmp.eq.s32.totalorder %v277_v18, %v2763_v2  ;;  %vm479_vm5 = vcmp.eq.s32.totalorder %v277_v18, %v2766_v4  ;;  %v280_v19 = vpop.permute.xlu0 %279  ;;  %v283_v20 = vpop.permute.xlu1 %282 }
  0xae   : > { %1969 = vmatmul.mubr.msk.f32.gmra.mxu0 %vm460_vm6, %v2362_v9  ;;  %2097 = vmatmul.mubr.msk.f32.gmra.mxu1 %vm462_vm7, %v2362_v9  ;;  %vm476_vm6 = vcmp.eq.s32.totalorder %v277_v18, %v2758_v63  ;;  %vm478_vm7 = vcmp.eq.s32.totalorder %v277_v18, %v2771_v7 }
  0xaf   : > { %1970 = vmatprep.mubr.msk.f32.mxu0 %vm465_vm8, %v2362_v9  ;;  %2098 = vmatprep.mubr.msk.f32.mxu1 %vm467_vm9, %v2362_v9  ;;  %vm481_vm8 = vcmp.eq.s32.totalorder %v280_v19, %v2763_v2  ;;  %vm483_vm9 = vcmp.eq.s32.totalorder %v280_v19, %v2766_v4  ;;  %v286_v21 = vpop.permute.xlu0 %285  ;;  %v289_v22 = vpop.permute.xlu1 %288 }
  0xb2   : > { %1971 = vmatmul.mubr.msk.f32.gmra.mxu0 %vm464_vm10, %v2362_v9  ;;  %2099 = vmatmul.mubr.msk.f32.gmra.mxu1 %vm466_vm11, %v2362_v9  ;;  %vm480_vm10 = vcmp.eq.s32.totalorder %v280_v19, %v2758_v63  ;;  %vm482_vm11 = vcmp.eq.s32.totalorder %v280_v19, %v2771_v7 }
  0xb3   : > { %1972 = vmatprep.mubr.msk.f32.mxu0 %vm469_vm12, %v2362_v9  ;;  %2100 = vmatprep.mubr.msk.f32.mxu1 %vm471_vm13, %v2362_v9  ;;  %vm485_vm12 = vcmp.eq.s32.totalorder %v283_v20, %v2763_v2  ;;  %vm487_vm13 = vcmp.eq.s32.totalorder %v283_v20, %v2766_v4  ;;  %v292_v23 = vpop.permute.xlu0 %291  ;;  %v295_v24 = vpop.permute.xlu1 %294 }
  0xb6   : > { %1973 = vmatmul.mubr.msk.f32.gmra.mxu0 %vm468_vm14, %v2362_v9  ;;  %2101 = vmatmul.mubr.msk.f32.gmra.mxu1 %vm470_vm15, %v2362_v9  ;;  %vm484_vm14 = vcmp.eq.s32.totalorder %v283_v20, %v2758_v63  ;;  %vm486_vm15 = vcmp.eq.s32.totalorder %v283_v20, %v2771_v7 }
  0xb7   : > { %1974 = vmatprep.mubr.msk.f32.mxu0 %vm473_vm0, %v2362_v9  ;;  %2102 = vmatprep.mubr.msk.f32.mxu1 %vm475_vm1, %v2362_v9  ;;  %vm489_vm0 = vcmp.eq.s32.totalorder %v286_v21, %v2763_v2  ;;  %vm491_vm1 = vcmp.eq.s32.totalorder %v286_v21, %v2766_v4  ;;  %v298_v25 = vpop.permute.xlu0 %297  ;;  %v301_v26 = vpop.permute.xlu1 %300 }
  0xba   : > { %1975 = vmatmul.mubr.msk.f32.gmra.mxu0 %vm472_vm2, %v2362_v9  ;;  %2103 = vmatmul.mubr.msk.f32.gmra.mxu1 %vm474_vm3, %v2362_v9  ;;  %vm488_vm2 = vcmp.eq.s32.totalorder %v286_v21, %v2758_v63  ;;  %vm490_vm3 = vcmp.eq.s32.totalorder %v286_v21, %v2771_v7 }
  0xbb   : > { %1976 = vmatprep.mubr.msk.f32.mxu0 %vm477_vm4, %v2362_v9  ;;  %2104 = vmatprep.mubr.msk.f32.mxu1 %vm479_vm5, %v2362_v9  ;;  %vm493_vm4 = vcmp.eq.s32.totalorder %v289_v22, %v2763_v2  ;;  %vm495_vm5 = vcmp.eq.s32.totalorder %v289_v22, %v2766_v4  ;;  %v304_v27 = vpop.permute.xlu0 %303  ;;  %v307_v28 = vpop.permute.xlu1 %306 }
  0xbe   : > { %1977 = vmatmul.mubr.msk.f32.gmra.mxu0 %vm476_vm6, %v2362_v9  ;;  %2105 = vmatmul.mubr.msk.f32.gmra.mxu1 %vm478_vm7, %v2362_v9  ;;  %vm492_vm6 = vcmp.eq.s32.totalorder %v289_v22, %v2758_v63  ;;  %vm494_vm7 = vcmp.eq.s32.totalorder %v289_v22, %v2771_v7 }
  0xbf   : > { %1978 = vmatprep.mubr.msk.f32.mxu0 %vm481_vm8, %v2362_v9  ;;  %2106 = vmatprep.mubr.msk.f32.mxu1 %vm483_vm9, %v2362_v9  ;;  %vm497_vm8 = vcmp.eq.s32.totalorder %v292_v23, %v2763_v2  ;;  %vm499_vm9 = vcmp.eq.s32.totalorder %v292_v23, %v2766_v4  ;;  %v310_v29 = vpop.permute.xlu0 %309  ;;  %v313_v30 = vpop.permute.xlu1 %312 }
  0xc2   : > { %1979 = vmatmul.mubr.msk.f32.gmra.mxu0 %vm480_vm10, %v2362_v9  ;;  %2107 = vmatmul.mubr.msk.f32.gmra.mxu1 %vm482_vm11, %v2362_v9  ;;  %vm496_vm10 = vcmp.eq.s32.totalorder %v292_v23, %v2758_v63  ;;  %vm498_vm11 = vcmp.eq.s32.totalorder %v292_v23, %v2771_v7 }
  0xc3   : > { %1980 = vmatprep.mubr.msk.f32.mxu0 %vm485_vm12, %v2362_v9  ;;  %2108 = vmatprep.mubr.msk.f32.mxu1 %vm487_vm13, %v2362_v9  ;;  %vm501_vm12 = vcmp.eq.s32.totalorder %v295_v24, %v2763_v2  ;;  %vm503_vm13 = vcmp.eq.s32.totalorder %v295_v24, %v2766_v4  ;;  %v316_v31 = vpop.permute.xlu0 %315  ;;  %v319_v32 = vpop.permute.xlu1 %318 }
  0xc6   : > { %1981 = vmatmul.mubr.msk.f32.gmra.mxu0 %vm484_vm14, %v2362_v9  ;;  %2109 = vmatmul.mubr.msk.f32.gmra.mxu1 %vm486_vm15, %v2362_v9  ;;  %vm500_vm14 = vcmp.eq.s32.totalorder %v295_v24, %v2758_v63  ;;  %vm502_vm15 = vcmp.eq.s32.totalorder %v295_v24, %v2771_v7 }
  0xc7   : > { %1982 = vmatprep.mubr.msk.f32.mxu0 %vm489_vm0, %v2362_v9  ;;  %2110 = vmatprep.mubr.msk.f32.mxu1 %vm491_vm1, %v2362_v9  ;;  %vm505_vm0 = vcmp.eq.s32.totalorder %v298_v25, %v2763_v2  ;;  %vm507_vm1 = vcmp.eq.s32.totalorder %v298_v25, %v2766_v4  ;;  %v322_v33 = vpop.permute.xlu0 %321  ;;  %v325_v34 = vpop.permute.xlu1 %324 }
  0xca   : > { %1983 = vmatmul.mubr.msk.f32.gmra.mxu0 %vm488_vm2, %v2362_v9  ;;  %2111 = vmatmul.mubr.msk.f32.gmra.mxu1 %vm490_vm3, %v2362_v9  ;;  %vm504_vm2 = vcmp.eq.s32.totalorder %v298_v25, %v2758_v63  ;;  %vm506_vm3 = vcmp.eq.s32.totalorder %v298_v25, %v2771_v7 }
  0xcb   : > { %1984 = vmatprep.mubr.msk.f32.mxu0 %vm493_vm4, %v2362_v9  ;;  %2112 = vmatprep.mubr.msk.f32.mxu1 %vm495_vm5, %v2362_v9  ;;  %vm509_vm4 = vcmp.eq.s32.totalorder %v301_v26, %v2763_v2  ;;  %vm511_vm5 = vcmp.eq.s32.totalorder %v301_v26, %v2766_v4  ;;  %v328_v35 = vpop.permute.xlu0 %327  ;;  %v331_v36 = vpop.permute.xlu1 %330 }
  0xce   : > { %1985 = vmatmul.mubr.msk.f32.gmra.mxu0 %vm492_vm6, %v2362_v9  ;;  %2113 = vmatmul.mubr.msk.f32.gmra.mxu1 %vm494_vm7, %v2362_v9  ;;  %vm508_vm6 = vcmp.eq.s32.totalorder %v301_v26, %v2758_v63  ;;  %vm510_vm7 = vcmp.eq.s32.totalorder %v301_v26, %v2771_v7 }
  0xcf   : > { %1986 = vmatprep.mubr.msk.f32.mxu0 %vm497_vm8, %v2362_v9  ;;  %2114 = vmatprep.mubr.msk.f32.mxu1 %vm499_vm9, %v2362_v9  ;;  %vm513_vm8 = vcmp.eq.s32.totalorder %v304_v27, %v2763_v2  ;;  %vm515_vm9 = vcmp.eq.s32.totalorder %v304_v27, %v2766_v4  ;;  %v334_v37 = vpop.permute.xlu0 %333  ;;  %v337_v38 = vpop.permute.xlu1 %336 }
  0xd2   : > { %1987 = vmatmul.mubr.msk.f32.gmra.mxu0 %vm496_vm10, %v2362_v9  ;;  %2115 = vmatmul.mubr.msk.f32.gmra.mxu1 %vm498_vm11, %v2362_v9  ;;  %vm512_vm10 = vcmp.eq.s32.totalorder %v304_v27, %v2758_v63  ;;  %vm514_vm11 = vcmp.eq.s32.totalorder %v304_v27, %v2771_v7 }
  0xd3   : > { %1988 = vmatprep.mubr.msk.f32.mxu0 %vm501_vm12, %v2362_v9  ;;  %2116 = vmatprep.mubr.msk.f32.mxu1 %vm503_vm13, %v2362_v9  ;;  %vm517_vm12 = vcmp.eq.s32.totalorder %v307_v28, %v2763_v2  ;;  %vm519_vm13 = vcmp.eq.s32.totalorder %v307_v28, %v2766_v4  ;;  %v340_v39 = vpop.permute.xlu0 %339  ;;  %v343_v40 = vpop.permute.xlu1 %342 }
  0xd6   : > { %1989 = vmatmul.mubr.msk.f32.gmra.mxu0 %vm500_vm14, %v2362_v9  ;;  %2117 = vmatmul.mubr.msk.f32.gmra.mxu1 %vm502_vm15, %v2362_v9  ;;  %vm516_vm14 = vcmp.eq.s32.totalorder %v307_v28, %v2758_v63  ;;  %vm518_vm15 = vcmp.eq.s32.totalorder %v307_v28, %v2771_v7 }
  0xd7   : > { %1990 = vmatprep.mubr.msk.f32.mxu0 %vm505_vm0, %v2362_v9  ;;  %2118 = vmatprep.mubr.msk.f32.mxu1 %vm507_vm1, %v2362_v9  ;;  %vm521_vm0 = vcmp.eq.s32.totalorder %v310_v29, %v2763_v2  ;;  %vm523_vm1 = vcmp.eq.s32.totalorder %v310_v29, %v2766_v4  ;;  %v346_v41 = vpop.permute.xlu0 %345  ;;  %v349_v42 = vpop.permute.xlu1 %348 }
  0xda   : > { %1991 = vmatmul.mubr.msk.f32.gmra.mxu0 %vm504_vm2, %v2362_v9  ;;  %2119 = vmatmul.mubr.msk.f32.gmra.mxu1 %vm506_vm3, %v2362_v9  ;;  %vm520_vm2 = vcmp.eq.s32.totalorder %v310_v29, %v2758_v63  ;;  %vm522_vm3 = vcmp.eq.s32.totalorder %v310_v29, %v2771_v7 }
  0xdb   : > { %1992 = vmatprep.mubr.msk.f32.mxu0 %vm509_vm4, %v2362_v9  ;;  %2120 = vmatprep.mubr.msk.f32.mxu1 %vm511_vm5, %v2362_v9  ;;  %vm525_vm4 = vcmp.eq.s32.totalorder %v313_v30, %v2763_v2  ;;  %vm527_vm5 = vcmp.eq.s32.totalorder %v313_v30, %v2766_v4  ;;  %v352_v43 = vpop.permute.xlu0 %351  ;;  %v355_v44 = vpop.permute.xlu1 %354 }
  0xde   : > { %1993 = vmatmul.mubr.msk.f32.gmra.mxu0 %vm508_vm6, %v2362_v9  ;;  %2121 = vmatmul.mubr.msk.f32.gmra.mxu1 %vm510_vm7, %v2362_v9  ;;  %vm524_vm6 = vcmp.eq.s32.totalorder %v313_v30, %v2758_v63  ;;  %vm526_vm7 = vcmp.eq.s32.totalorder %v313_v30, %v2771_v7 }
  0xdf   : > { %1994 = vmatprep.mubr.msk.f32.mxu0 %vm513_vm8, %v2362_v9  ;;  %2122 = vmatprep.mubr.msk.f32.mxu1 %vm515_vm9, %v2362_v9  ;;  %vm529_vm8 = vcmp.eq.s32.totalorder %v316_v31, %v2763_v2  ;;  %vm531_vm9 = vcmp.eq.s32.totalorder %v316_v31, %v2766_v4  ;;  %v358_v45 = vpop.permute.xlu0 %357  ;;  %v361_v46 = vpop.permute.xlu1 %360 }
  0xe2   : > { %1995 = vmatmul.mubr.msk.f32.gmra.mxu0 %vm512_vm10, %v2362_v9  ;;  %2123 = vmatmul.mubr.msk.f32.gmra.mxu1 %vm514_vm11, %v2362_v9  ;;  %vm528_vm10 = vcmp.eq.s32.totalorder %v316_v31, %v2758_v63  ;;  %vm530_vm11 = vcmp.eq.s32.totalorder %v316_v31, %v2771_v7 }
  0xe3   : > { %1996 = vmatprep.mubr.msk.f32.mxu0 %vm517_vm12, %v2362_v9  ;;  %2124 = vmatprep.mubr.msk.f32.mxu1 %vm519_vm13, %v2362_v9  ;;  %vm533_vm12 = vcmp.eq.s32.totalorder %v319_v32, %v2763_v2  ;;  %vm535_vm13 = vcmp.eq.s32.totalorder %v319_v32, %v2766_v4  ;;  %v364_v47 = vpop.permute.xlu0 %363  ;;  %v367_v3 = vpop.permute.xlu1 %366 }
  0xe6   : > { %1997 = vmatmul.mubr.msk.f32.gmra.mxu0 %vm516_vm14, %v2362_v9  ;;  %2125 = vmatmul.mubr.msk.f32.gmra.mxu1 %vm518_vm15, %v2362_v9  ;;  %vm532_vm14 = vcmp.eq.s32.totalorder %v319_v32, %v2758_v63  ;;  %vm534_vm15 = vcmp.eq.s32.totalorder %v319_v32, %v2771_v7 }
  0xe7   : > { %1998 = vmatprep.mubr.msk.f32.mxu0 %vm521_vm0, %v2362_v9  ;;  %2126 = vmatprep.mubr.msk.f32.mxu1 %vm523_vm1, %v2362_v9  ;;  %vm537_vm0 = vcmp.eq.s32.totalorder %v322_v33, %v2763_v2  ;;  %vm539_vm1 = vcmp.eq.s32.totalorder %v322_v33, %v2766_v4  ;;  %v370_v48 = vpop.permute.xlu0 %369  ;;  %v373_v49 = vpop.permute.xlu1 %372 }
  0xea   : > { %1999 = vmatmul.mubr.msk.f32.gmra.mxu0 %vm520_vm2, %v2362_v9  ;;  %2127 = vmatmul.mubr.msk.f32.gmra.mxu1 %vm522_vm3, %v2362_v9  ;;  %vm536_vm2 = vcmp.eq.s32.totalorder %v322_v33, %v2758_v63  ;;  %vm538_vm3 = vcmp.eq.s32.totalorder %v322_v33, %v2771_v7 }
  0xeb   : > { %2000 = vmatprep.mubr.msk.f32.mxu0 %vm525_vm4, %v2362_v9  ;;  %2128 = vmatprep.mubr.msk.f32.mxu1 %vm527_vm5, %v2362_v9  ;;  %vm541_vm4 = vcmp.eq.s32.totalorder %v325_v34, %v2763_v2  ;;  %vm543_vm5 = vcmp.eq.s32.totalorder %v325_v34, %v2766_v4  ;;  %v376_v50 = vpop.permute.xlu0 %375  ;;  %v379_v51 = vpop.permute.xlu1 %378 }
  0xee   : > { %2001 = vmatmul.mubr.msk.f32.gmra.mxu0 %vm524_vm6, %v2362_v9  ;;  %2129 = vmatmul.mubr.msk.f32.gmra.mxu1 %vm526_vm7, %v2362_v9  ;;  %vm540_vm6 = vcmp.eq.s32.totalorder %v325_v34, %v2758_v63  ;;  %vm542_vm7 = vcmp.eq.s32.totalorder %v325_v34, %v2771_v7 }
  0xef   : > { %2002 = vmatprep.mubr.msk.f32.mxu0 %vm529_vm8, %v2362_v9  ;;  %2130 = vmatprep.mubr.msk.f32.mxu1 %vm531_vm9, %v2362_v9  ;;  %vm545_vm8 = vcmp.eq.s32.totalorder %v328_v35, %v2763_v2  ;;  %vm547_vm9 = vcmp.eq.s32.totalorder %v328_v35, %v2766_v4  ;;  %v382_v52 = vpop.permute.xlu0 %381  ;;  %v385_v53 = vpop.permute.xlu1 %384 }
  0xf2   : > { %2003 = vmatmul.mubr.msk.f32.gmra.mxu0 %vm528_vm10, %v2362_v9  ;;  %2131 = vmatmul.mubr.msk.f32.gmra.mxu1 %vm530_vm11, %v2362_v9  ;;  %vm544_vm10 = vcmp.eq.s32.totalorder %v328_v35, %v2758_v63  ;;  %vm546_vm11 = vcmp.eq.s32.totalorder %v328_v35, %v2771_v7 }
  0xf3   : > { %2004 = vmatprep.mubr.msk.f32.mxu0 %vm533_vm12, %v2362_v9  ;;  %2132 = vmatprep.mubr.msk.f32.mxu1 %vm535_vm13, %v2362_v9  ;;  %vm549_vm12 = vcmp.eq.s32.totalorder %v331_v36, %v2763_v2  ;;  %vm551_vm13 = vcmp.eq.s32.totalorder %v331_v36, %v2766_v4  ;;  %v388_v54 = vpop.permute.xlu0 %387  ;;  %v391_v55 = vpop.permute.xlu1 %390 }
  0xf6   : > { %2005 = vmatmul.mubr.msk.f32.gmra.mxu0 %vm532_vm14, %v2362_v9  ;;  %2133 = vmatmul.mubr.msk.f32.gmra.mxu1 %vm534_vm15, %v2362_v9  ;;  %vm548_vm14 = vcmp.eq.s32.totalorder %v331_v36, %v2758_v63  ;;  %vm550_vm15 = vcmp.eq.s32.totalorder %v331_v36, %v2771_v7 }
  0xf7   : > { %2006 = vmatprep.mubr.msk.f32.mxu0 %vm537_vm0, %v2362_v9  ;;  %2134 = vmatprep.mubr.msk.f32.mxu1 %vm539_vm1, %v2362_v9  ;;  %vm553_vm0 = vcmp.eq.s32.totalorder %v334_v37, %v2763_v2  ;;  %vm555_vm1 = vcmp.eq.s32.totalorder %v334_v37, %v2766_v4  ;;  %v394_v56 = vpop.permute.xlu0 %393  ;;  %v397_v57 = vpop.permute.xlu1 %396 }
  0xfa   : > { %2007 = vmatmul.mubr.msk.f32.gmra.mxu0 %vm536_vm2, %v2362_v9  ;;  %2135 = vmatmul.mubr.msk.f32.gmra.mxu1 %vm538_vm3, %v2362_v9  ;;  %vm552_vm2 = vcmp.eq.s32.totalorder %v334_v37, %v2758_v63  ;;  %vm554_vm3 = vcmp.eq.s32.totalorder %v334_v37, %v2771_v7 }
  0xfb   : > { %2008 = vmatprep.mubr.msk.f32.mxu0 %vm541_vm4, %v2362_v9  ;;  %2136 = vmatprep.mubr.msk.f32.mxu1 %vm543_vm5, %v2362_v9  ;;  %vm557_vm4 = vcmp.eq.s32.totalorder %v337_v38, %v2763_v2  ;;  %vm559_vm5 = vcmp.eq.s32.totalorder %v337_v38, %v2766_v4  ;;  %v400_v60 = vpop.permute.xlu0 %399  ;;  %v403_v6 = vpop.permute.xlu1 %402 }
  0xfe   : > { %2009 = vmatmul.mubr.msk.f32.gmra.mxu0 %vm540_vm6, %v2362_v9  ;;  %2137 = vmatmul.mubr.msk.f32.gmra.mxu1 %vm542_vm7, %v2362_v9  ;;  %vm556_vm6 = vcmp.eq.s32.totalorder %v337_v38, %v2758_v63  ;;  %vm558_vm7 = vcmp.eq.s32.totalorder %v337_v38, %v2771_v7 }
  0xff   : > { %2010 = vmatprep.mubr.msk.f32.mxu0 %vm545_vm8, %v2362_v9  ;;  %2138 = vmatprep.mubr.msk.f32.mxu1 %vm547_vm9, %v2362_v9  ;;  %vm561_vm8 = vcmp.eq.s32.totalorder %v340_v39, %v2763_v2  ;;  %vm563_vm9 = vcmp.eq.s32.totalorder %v340_v39, %v2766_v4  ;;  %v406_v14 = vpop.permute.xlu0 %405  ;;  %v409_v20 = vpop.permute.xlu1 %408 }
 0x102   : > { %2011 = vmatmul.mubr.msk.f32.gmra.mxu0 %vm544_vm10, %v2362_v9  ;;  %2139 = vmatmul.mubr.msk.f32.gmra.mxu1 %vm546_vm11, %v2362_v9  ;;  %vm560_vm10 = vcmp.eq.s32.totalorder %v340_v39, %v2758_v63  ;;  %vm562_vm11 = vcmp.eq.s32.totalorder %v340_v39, %v2771_v7 }
 0x103   : > { %2012 = vmatprep.mubr.msk.f32.mxu0 %vm549_vm12, %v2362_v9  ;;  %2140 = vmatprep.mubr.msk.f32.mxu1 %vm551_vm13, %v2362_v9  ;;  %vm565_vm12 = vcmp.eq.s32.totalorder %v343_v40, %v2763_v2  ;;  %vm567_vm13 = vcmp.eq.s32.totalorder %v343_v40, %v2766_v4  ;;  %v412_v26 = vpop.permute.xlu0 %411  ;;  %v415_v32 = vpop.permute.xlu1 %414 }
 0x106   : > { %2013 = vmatmul.mubr.msk.f32.gmra.mxu0 %vm548_vm14, %v2362_v9  ;;  %2141 = vmatmul.mubr.msk.f32.gmra.mxu1 %vm550_vm15, %v2362_v9  ;;  %vm564_vm14 = vcmp.eq.s32.totalorder %v343_v40, %v2758_v63  ;;  %vm566_vm15 = vcmp.eq.s32.totalorder %v343_v40, %v2771_v7 }
 0x107   : > { %2014 = vmatprep.mubr.msk.f32.mxu0 %vm553_vm0, %v2362_v9  ;;  %2142 = vmatprep.mubr.msk.f32.mxu1 %vm555_vm1, %v2362_v9  ;;  %vm569_vm0 = vcmp.eq.s32.totalorder %v346_v41, %v2763_v2  ;;  %vm571_vm1 = vcmp.eq.s32.totalorder %v346_v41, %v2766_v4  ;;  %v418_v38 = vpop.permute.xlu0 %417 }
 0x10a   : > { %2015 = vmatmul.mubr.msk.f32.gmra.mxu0 %vm552_vm2, %v2362_v9  ;;  %2143 = vmatmul.mubr.msk.f32.gmra.mxu1 %vm554_vm3, %v2362_v9  ;;  %vm568_vm2 = vcmp.eq.s32.totalorder %v346_v41, %v2758_v63  ;;  %vm570_vm3 = vcmp.eq.s32.totalorder %v346_v41, %v2771_v7 }
 0x10b   : > { %2016 = vmatprep.mubr.msk.f32.mxu0 %vm557_vm4, %v2362_v9  ;;  %2144 = vmatprep.mubr.msk.f32.mxu1 %vm559_vm5, %v2362_v9  ;;  %vm573_vm4 = vcmp.eq.s32.totalorder %v349_v42, %v2763_v2  ;;  %vm575_vm5 = vcmp.eq.s32.totalorder %v349_v42, %v2766_v4 }
 0x10e   : > { %2017 = vmatmul.mubr.msk.f32.gmra.mxu0 %vm556_vm6, %v2362_v9  ;;  %2145 = vmatmul.mubr.msk.f32.gmra.mxu1 %vm558_vm7, %v2362_v9  ;;  %vm572_vm6 = vcmp.eq.s32.totalorder %v349_v42, %v2758_v63  ;;  %vm574_vm7 = vcmp.eq.s32.totalorder %v349_v42, %v2771_v7 }
 0x10f   : > { %2018 = vmatprep.mubr.msk.f32.mxu0 %vm561_vm8, %v2362_v9  ;;  %2146 = vmatprep.mubr.msk.f32.mxu1 %vm563_vm9, %v2362_v9  ;;  %vm577_vm8 = vcmp.eq.s32.totalorder %v352_v43, %v2763_v2  ;;  %vm579_vm9 = vcmp.eq.s32.totalorder %v352_v43, %v2766_v4 }
 0x112   : > { %2019 = vmatmul.mubr.msk.f32.gmra.mxu0 %vm560_vm10, %v2362_v9  ;;  %2147 = vmatmul.mubr.msk.f32.gmra.mxu1 %vm562_vm11, %v2362_v9  ;;  %vm576_vm10 = vcmp.eq.s32.totalorder %v352_v43, %v2758_v63  ;;  %vm578_vm11 = vcmp.eq.s32.totalorder %v352_v43, %v2771_v7 }
 0x113   : > { %2020 = vmatprep.mubr.msk.f32.mxu0 %vm565_vm12, %v2362_v9  ;;  %2148 = vmatprep.mubr.msk.f32.mxu1 %vm567_vm13, %v2362_v9  ;;  %vm581_vm12 = vcmp.eq.s32.totalorder %v355_v44, %v2763_v2  ;;  %vm583_vm13 = vcmp.eq.s32.totalorder %v355_v44, %v2766_v4 }
 0x116   : > { %2021 = vmatmul.mubr.msk.f32.gmra.mxu0 %vm564_vm14, %v2362_v9  ;;  %2149 = vmatmul.mubr.msk.f32.gmra.mxu1 %vm566_vm15, %v2362_v9  ;;  %vm580_vm14 = vcmp.eq.s32.totalorder %v355_v44, %v2758_v63  ;;  %vm582_vm15 = vcmp.eq.s32.totalorder %v355_v44, %v2771_v7  ;;  %v421_v44 = vpop.permute.xlu1 %420 }
 0x117   : > { %2022 = vmatprep.mubr.msk.f32.mxu0 %vm569_vm0, %v2362_v9  ;;  %2150 = vmatprep.mubr.msk.f32.mxu1 %vm571_vm1, %v2362_v9  ;;  %vm585_vm0 = vcmp.eq.s32.totalorder %v358_v45, %v2763_v2  ;;  %vm587_vm1 = vcmp.eq.s32.totalorder %v358_v45, %v2766_v4 }
 0x11a   : > { %2023 = vmatmul.mubr.msk.f32.gmra.mxu0 %vm568_vm2, %v2362_v9  ;;  %2151 = vmatmul.mubr.msk.f32.gmra.mxu1 %vm570_vm3, %v2362_v9  ;;  %vm584_vm2 = vcmp.eq.s32.totalorder %v358_v45, %v2758_v63  ;;  %vm586_vm3 = vcmp.eq.s32.totalorder %v358_v45, %v2771_v7 }
 0x11b   : > { %2024 = vmatprep.mubr.msk.f32.mxu0 %vm573_vm4, %v2362_v9  ;;  %2152 = vmatprep.mubr.msk.f32.mxu1 %vm575_vm5, %v2362_v9  ;;  %vm589_vm4 = vcmp.eq.s32.totalorder %v361_v46, %v2763_v2  ;;  %vm591_vm5 = vcmp.eq.s32.totalorder %v361_v46, %v2766_v4 }
 0x11e   : > { %2025 = vmatmul.mubr.msk.f32.gmra.mxu0 %vm572_vm6, %v2362_v9  ;;  %2153 = vmatmul.mubr.msk.f32.gmra.mxu1 %vm574_vm7, %v2362_v9  ;;  %vm588_vm6 = vcmp.eq.s32.totalorder %v361_v46, %v2758_v63  ;;  %vm590_vm7 = vcmp.eq.s32.totalorder %v361_v46, %v2771_v7 }
 0x11f   : > { %2026 = vmatprep.mubr.msk.f32.mxu0 %vm577_vm8, %v2362_v9  ;;  %2154 = vmatprep.mubr.msk.f32.mxu1 %vm579_vm9, %v2362_v9  ;;  %vm593_vm8 = vcmp.eq.s32.totalorder %v364_v47, %v2763_v2  ;;  %vm595_vm9 = vcmp.eq.s32.totalorder %v364_v47, %v2766_v4 }
 0x122   : > { %2027 = vmatmul.mubr.msk.f32.gmra.mxu0 %vm576_vm10, %v2362_v9  ;;  %2155 = vmatmul.mubr.msk.f32.gmra.mxu1 %vm578_vm11, %v2362_v9  ;;  %vm592_vm10 = vcmp.eq.s32.totalorder %v364_v47, %v2758_v63  ;;  %vm594_vm11 = vcmp.eq.s32.totalorder %v364_v47, %v2771_v7 }
 0x123   : > { %2028 = vmatprep.mubr.msk.f32.mxu0 %vm581_vm12, %v2362_v9  ;;  %2156 = vmatprep.mubr.msk.f32.mxu1 %vm583_vm13, %v2362_v9  ;;  %vm597_vm12 = vcmp.eq.s32.totalorder %v367_v3, %v2763_v2  ;;  %vm599_vm13 = vcmp.eq.s32.totalorder %v367_v3, %v2766_v4 }
 0x126   : > { %2029 = vmatmul.mubr.msk.f32.gmra.mxu0 %vm580_vm14, %v2362_v9  ;;  %2157 = vmatmul.mubr.msk.f32.gmra.mxu1 %vm582_vm15, %v2362_v9  ;;  %vm596_vm14 = vcmp.eq.s32.totalorder %v367_v3, %v2758_v63  ;;  %vm598_vm15 = vcmp.eq.s32.totalorder %v367_v3, %v2771_v7 }
 0x127   : > { %2030 = vmatprep.mubr.msk.f32.mxu0 %vm585_vm0, %v2362_v9  ;;  %2158 = vmatprep.mubr.msk.f32.mxu1 %vm587_vm1, %v2362_v9  ;;  %vm601_vm0 = vcmp.eq.s32.totalorder %v370_v48, %v2763_v2  ;;  %vm603_vm1 = vcmp.eq.s32.totalorder %v370_v48, %v2766_v4 }
 0x12a   : > { %2031 = vmatmul.mubr.msk.f32.gmra.mxu0 %vm584_vm2, %v2362_v9  ;;  %2159 = vmatmul.mubr.msk.f32.gmra.mxu1 %vm586_vm3, %v2362_v9  ;;  %vm600_vm2 = vcmp.eq.s32.totalorder %v370_v48, %v2758_v63  ;;  %vm602_vm3 = vcmp.eq.s32.totalorder %v370_v48, %v2771_v7 }
 0x12b   : > { %2032 = vmatprep.mubr.msk.f32.mxu0 %vm589_vm4, %v2362_v9  ;;  %2160 = vmatprep.mubr.msk.f32.mxu1 %vm591_vm5, %v2362_v9  ;;  %vm605_vm4 = vcmp.eq.s32.totalorder %v373_v49, %v2763_v2  ;;  %vm607_vm5 = vcmp.eq.s32.totalorder %v373_v49, %v2766_v4 }
 0x12e   : > { %2033 = vmatmul.mubr.msk.f32.gmra.mxu0 %vm588_vm6, %v2362_v9  ;;  %2161 = vmatmul.mubr.msk.f32.gmra.mxu1 %vm590_vm7, %v2362_v9  ;;  %vm604_vm6 = vcmp.eq.s32.totalorder %v373_v49, %v2758_v63  ;;  %vm606_vm7 = vcmp.eq.s32.totalorder %v373_v49, %v2771_v7  ;;  %v424_v49 = vpop.permute.xlu0 %423 }
 0x12f   : > { %2034 = vmatprep.mubr.msk.f32.mxu0 %vm593_vm8, %v2362_v9  ;;  %2162 = vmatprep.mubr.msk.f32.mxu1 %vm595_vm9, %v2362_v9  ;;  %vm609_vm8 = vcmp.eq.s32.totalorder %v376_v50, %v2763_v2  ;;  %vm611_vm9 = vcmp.eq.s32.totalorder %v376_v50, %v2766_v4 }
 0x132   : > { %2035 = vmatmul.mubr.msk.f32.gmra.mxu0 %vm592_vm10, %v2362_v9  ;;  %2163 = vmatmul.mubr.msk.f32.gmra.mxu1 %vm594_vm11, %v2362_v9  ;;  %vm608_vm10 = vcmp.eq.s32.totalorder %v376_v50, %v2758_v63  ;;  %vm610_vm11 = vcmp.eq.s32.totalorder %v376_v50, %v2771_v7 }
 0x133   : > { %2036 = vmatprep.mubr.msk.f32.mxu0 %vm597_vm12, %v2362_v9  ;;  %2164 = vmatprep.mubr.msk.f32.mxu1 %vm599_vm13, %v2362_v9  ;;  %vm613_vm12 = vcmp.eq.s32.totalorder %v379_v51, %v2763_v2  ;;  %vm615_vm13 = vcmp.eq.s32.totalorder %v379_v51, %v2766_v4 }
 0x136   : > { %2037 = vmatmul.mubr.msk.f32.gmra.mxu0 %vm596_vm14, %v2362_v9  ;;  %2165 = vmatmul.mubr.msk.f32.gmra.mxu1 %vm598_vm15, %v2362_v9  ;;  %vm612_vm14 = vcmp.eq.s32.totalorder %v379_v51, %v2758_v63  ;;  %vm614_vm15 = vcmp.eq.s32.totalorder %v379_v51, %v2771_v7 }
 0x137   : > { %2038 = vmatprep.mubr.msk.f32.mxu0 %vm601_vm0, %v2362_v9  ;;  %2166 = vmatprep.mubr.msk.f32.mxu1 %vm603_vm1, %v2362_v9  ;;  %vm617_vm0 = vcmp.eq.s32.totalorder %v382_v52, %v2763_v2  ;;  %vm619_vm1 = vcmp.eq.s32.totalorder %v382_v52, %v2766_v4 }
 0x13a   : > { %2039 = vmatmul.mubr.msk.f32.gmra.mxu0 %vm600_vm2, %v2362_v9  ;;  %2167 = vmatmul.mubr.msk.f32.gmra.mxu1 %vm602_vm3, %v2362_v9  ;;  %vm616_vm2 = vcmp.eq.s32.totalorder %v382_v52, %v2758_v63  ;;  %vm618_vm3 = vcmp.eq.s32.totalorder %v382_v52, %v2771_v7 }
 0x13b   : > { %2040 = vmatprep.mubr.msk.f32.mxu0 %vm605_vm4, %v2362_v9  ;;  %2168 = vmatprep.mubr.msk.f32.mxu1 %vm607_vm5, %v2362_v9  ;;  %vm621_vm4 = vcmp.eq.s32.totalorder %v385_v53, %v2763_v2  ;;  %vm623_vm5 = vcmp.eq.s32.totalorder %v385_v53, %v2766_v4 }
 0x13e   : > { %2041 = vmatmul.mubr.msk.f32.gmra.mxu0 %vm604_vm6, %v2362_v9  ;;  %2169 = vmatmul.mubr.msk.f32.gmra.mxu1 %vm606_vm7, %v2362_v9  ;;  %vm620_vm6 = vcmp.eq.s32.totalorder %v385_v53, %v2758_v63  ;;  %vm622_vm7 = vcmp.eq.s32.totalorder %v385_v53, %v2771_v7 }
 0x13f   : > { %2042 = vmatprep.mubr.msk.f32.mxu0 %vm609_vm8, %v2362_v9  ;;  %2170 = vmatprep.mubr.msk.f32.mxu1 %vm611_vm9, %v2362_v9  ;;  %vm625_vm8 = vcmp.eq.s32.totalorder %v388_v54, %v2763_v2  ;;  %vm627_vm9 = vcmp.eq.s32.totalorder %v388_v54, %v2766_v4 }
 0x142   : > { %2043 = vmatmul.mubr.msk.f32.gmra.mxu0 %vm608_vm10, %v2362_v9  ;;  %2171 = vmatmul.mubr.msk.f32.gmra.mxu1 %vm610_vm11, %v2362_v9  ;;  %vm624_vm10 = vcmp.eq.s32.totalorder %v388_v54, %v2758_v63  ;;  %vm626_vm11 = vcmp.eq.s32.totalorder %v388_v54, %v2771_v7 }
 0x143   : > { %2044 = vmatprep.mubr.msk.f32.mxu0 %vm613_vm12, %v2362_v9  ;;  %2172 = vmatprep.mubr.msk.f32.mxu1 %vm615_vm13, %v2362_v9  ;;  %vm629_vm12 = vcmp.eq.s32.totalorder %v391_v55, %v2763_v2  ;;  %vm631_vm13 = vcmp.eq.s32.totalorder %v391_v55, %v2766_v4 }
 0x146   : > { %2045 = vmatmul.mubr.msk.f32.gmra.mxu0 %vm612_vm14, %v2362_v9  ;;  %2173 = vmatmul.mubr.msk.f32.gmra.mxu1 %vm614_vm15, %v2362_v9  ;;  %vm628_vm14 = vcmp.eq.s32.totalorder %v391_v55, %v2758_v63  ;;  %vm630_vm15 = vcmp.eq.s32.totalorder %v391_v55, %v2771_v7  ;;  %v427_v55 = vpop.permute.xlu1 %426 }
 0x147   : > { %2046 = vmatprep.mubr.msk.f32.mxu0 %vm617_vm0, %v2362_v9  ;;  %2174 = vmatprep.mubr.msk.f32.mxu1 %vm619_vm1, %v2362_v9  ;;  %vm633_vm0 = vcmp.eq.s32.totalorder %v394_v56, %v2763_v2  ;;  %vm635_vm1 = vcmp.eq.s32.totalorder %v394_v56, %v2766_v4 }
 0x14a   : > { %2047 = vmatmul.mubr.msk.f32.gmra.mxu0 %vm616_vm2, %v2362_v9  ;;  %2175 = vmatmul.mubr.msk.f32.gmra.mxu1 %vm618_vm3, %v2362_v9  ;;  %vm632_vm2 = vcmp.eq.s32.totalorder %v394_v56, %v2758_v63  ;;  %vm634_vm3 = vcmp.eq.s32.totalorder %v394_v56, %v2771_v7 }
 0x14b   : > { %2048 = vmatprep.mubr.msk.f32.mxu0 %vm621_vm4, %v2362_v9  ;;  %2176 = vmatprep.mubr.msk.f32.mxu1 %vm623_vm5, %v2362_v9  ;;  %vm637_vm4 = vcmp.eq.s32.totalorder %v397_v57, %v2763_v2  ;;  %vm639_vm5 = vcmp.eq.s32.totalorder %v397_v57, %v2766_v4 }
 0x14e   : > { %2049 = vmatmul.mubr.msk.f32.gmra.mxu0 %vm620_vm6, %v2362_v9  ;;  %2177 = vmatmul.mubr.msk.f32.gmra.mxu1 %vm622_vm7, %v2362_v9  ;;  %vm636_vm6 = vcmp.eq.s32.totalorder %v397_v57, %v2758_v63  ;;  %vm638_vm7 = vcmp.eq.s32.totalorder %v397_v57, %v2771_v7 }
 0x14f   : > { %2050 = vmatprep.mubr.msk.f32.mxu0 %vm625_vm8, %v2362_v9  ;;  %2178 = vmatprep.mubr.msk.f32.mxu1 %vm627_vm9, %v2362_v9  ;;  %vm641_vm8 = vcmp.eq.s32.totalorder %v400_v60, %v2763_v2  ;;  %vm643_vm9 = vcmp.eq.s32.totalorder %v400_v60, %v2766_v4 }
 0x152   : > { %2051 = vmatmul.mubr.msk.f32.gmra.mxu0 %vm624_vm10, %v2362_v9  ;;  %2179 = vmatmul.mubr.msk.f32.gmra.mxu1 %vm626_vm11, %v2362_v9  ;;  %vm640_vm10 = vcmp.eq.s32.totalorder %v400_v60, %v2758_v63  ;;  %vm642_vm11 = vcmp.eq.s32.totalorder %v400_v60, %v2771_v7 }
 0x153   : > { %2052 = vmatprep.mubr.msk.f32.mxu0 %vm629_vm12, %v2362_v9  ;;  %2180 = vmatprep.mubr.msk.f32.mxu1 %vm631_vm13, %v2362_v9  ;;  %vm645_vm12 = vcmp.eq.s32.totalorder %v403_v6, %v2763_v2  ;;  %vm647_vm13 = vcmp.eq.s32.totalorder %v403_v6, %v2766_v4 }
 0x156   : > { %2053 = vmatmul.mubr.msk.f32.gmra.mxu0 %vm628_vm14, %v2362_v9  ;;  %2181 = vmatmul.mubr.msk.f32.gmra.mxu1 %vm630_vm15, %v2362_v9  ;;  %vm644_vm14 = vcmp.eq.s32.totalorder %v403_v6, %v2758_v63  ;;  %vm646_vm15 = vcmp.eq.s32.totalorder %v403_v6, %v2771_v7 }
 0x157   : > { %2054 = vmatprep.mubr.msk.f32.mxu0 %vm633_vm0, %v2362_v9  ;;  %2182 = vmatprep.mubr.msk.f32.mxu1 %vm635_vm1, %v2362_v9  ;;  %vm649_vm0 = vcmp.eq.s32.totalorder %v406_v14, %v2763_v2  ;;  %vm651_vm1 = vcmp.eq.s32.totalorder %v406_v14, %v2766_v4 }
 0x15a   : > { %v1082_v58 = vpop.f32.mrf.mxu0  ;;  %2055 = vmatmul.mubr.msk.f32.gmra.mxu0 %vm632_vm2, %v2362_v9  ;;  %v1467_v59 = vpop.f32.mrf.mxu1  ;;  %2183 = vmatmul.mubr.msk.f32.gmra.mxu1 %vm634_vm3, %v2362_v9  ;;  %vm648_vm2 = vcmp.eq.s32.totalorder %v406_v14, %v2758_v63  ;;  %vm650_vm3 = vcmp.eq.s32.totalorder %v406_v14, %v2771_v7 }
 0x15b   : > { %v1468_v61 = vadd.f32 %v1467_v59, %v1082_v58  ;;  %2056 = vmatprep.mubr.msk.f32.mxu0 %vm637_vm4, %v2362_v9  ;;  %2184 = vmatprep.mubr.msk.f32.mxu1 %vm639_vm5, %v2362_v9  ;;  %vm653_vm4 = vcmp.eq.s32.totalorder %v409_v20, %v2763_v2  ;;  %vm655_vm5 = vcmp.eq.s32.totalorder %v409_v20, %v2766_v4 }
 0x15c   : > { %v1084_v62 = vpop.f32.mrf.mxu0  ;;  %v1469_v0 = vpop.f32.mrf.mxu1 }
 0x15d   : > { %1786 = vst [vmem:[%s3172_s15] sm:$0xff] %v1468_v61  ;;  %v430_v61 = vpop.permute.xlu0 %429 }
 0x15e   : > { %v1087_v1 = vpop.f32.mrf.mxu0  ;;  %2057 = vmatmul.mubr.msk.f32.gmra.mxu0 %vm636_vm6, %v2362_v9  ;;  %v1472_v5 = vpop.f32.mrf.mxu1  ;;  %2185 = vmatmul.mubr.msk.f32.gmra.mxu1 %vm638_vm7, %v2362_v9  ;;  %vm652_vm6 = vcmp.eq.s32.totalorder %v409_v20, %v2758_v63  ;;  %vm654_vm7 = vcmp.eq.s32.totalorder %v409_v20, %v2771_v7 }
 0x15f   : > { %v1473_v8 = vadd.f32 %v1472_v5, %v1087_v1  ;;  %2058 = vmatprep.mubr.msk.f32.mxu0 %vm641_vm8, %v2362_v9  ;;  %2186 = vmatprep.mubr.msk.f32.mxu1 %vm643_vm9, %v2362_v9  ;;  %vm657_vm8 = vcmp.eq.s32.totalorder %v412_v26, %v2763_v2  ;;  %vm659_vm9 = vcmp.eq.s32.totalorder %v412_v26, %v2766_v4 }
 0x160   : > { %v1089_v10 = vpop.f32.mrf.mxu0  ;;  %v1474_v11 = vpop.f32.mrf.mxu1 }
 0x161   : > { %1787 = vst [vmem:[%s3172_s15 + $0x8] sm:$0xff] %v1473_v8  ;;  %v433_v8 = vpop.permute.xlu1 %432 }
 0x162   : > { %v1092_v12 = vpop.f32.mrf.mxu0  ;;  %2059 = vmatmul.mubr.msk.f32.gmra.mxu0 %vm640_vm10, %v2362_v9  ;;  %v1477_v13 = vpop.f32.mrf.mxu1  ;;  %2187 = vmatmul.mubr.msk.f32.gmra.mxu1 %vm642_vm11, %v2362_v9  ;;  %vm656_vm10 = vcmp.eq.s32.totalorder %v412_v26, %v2758_v63  ;;  %vm658_vm11 = vcmp.eq.s32.totalorder %v412_v26, %v2771_v7 }
 0x163   : > { %v1478_v15 = vadd.f32 %v1477_v13, %v1092_v12  ;;  %2060 = vmatprep.mubr.msk.f32.mxu0 %vm645_vm12, %v2362_v9  ;;  %2188 = vmatprep.mubr.msk.f32.mxu1 %vm647_vm13, %v2362_v9  ;;  %vm661_vm12 = vcmp.eq.s32.totalorder %v415_v32, %v2763_v2  ;;  %vm663_vm13 = vcmp.eq.s32.totalorder %v415_v32, %v2766_v4 }
 0x164   : > { %v1094_v16 = vpop.f32.mrf.mxu0  ;;  %v1479_v17 = vpop.f32.mrf.mxu1 }
 0x165   : > { %1788 = vst [vmem:[%s3172_s15 + $0x10] sm:$0xff] %v1478_v15  ;;  %v436_v15 = vpop.permute.xlu0 %435 }
 0x166   : > { %v1097_v18 = vpop.f32.mrf.mxu0  ;;  %2061 = vmatmul.mubr.msk.f32.gmra.mxu0 %vm644_vm14, %v2362_v9  ;;  %v1482_v19 = vpop.f32.mrf.mxu1  ;;  %2189 = vmatmul.mubr.msk.f32.gmra.mxu1 %vm646_vm15, %v2362_v9  ;;  %vm660_vm14 = vcmp.eq.s32.totalorder %v415_v32, %v2758_v63  ;;  %vm662_vm15 = vcmp.eq.s32.totalorder %v415_v32, %v2771_v7 }
 0x167   : > { %v1483_v21 = vadd.f32 %v1482_v19, %v1097_v18  ;;  %2062 = vmatprep.mubr.msk.f32.mxu0 %vm649_vm0, %v2362_v9  ;;  %2190 = vmatprep.mubr.msk.f32.mxu1 %vm651_vm1, %v2362_v9  ;;  %vm665_vm0 = vcmp.eq.s32.totalorder %v418_v38, %v2763_v2  ;;  %vm667_vm1 = vcmp.eq.s32.totalorder %v418_v38, %v2766_v4 }
 0x168   : > { %v1099_v22 = vpop.f32.mrf.mxu0  ;;  %v1484_v23 = vpop.f32.mrf.mxu1 }
 0x169   : > { %1789 = vst [vmem:[%s3172_s15 + $0x18] sm:$0xff] %v1483_v21  ;;  %v439_v21 = vpop.permute.xlu1 %438 }
 0x16a   : > { %v1102_v24 = vpop.f32.mrf.mxu0  ;;  %2063 = vmatmul.mubr.msk.f32.gmra.mxu0 %vm648_vm2, %v2362_v9  ;;  %v1487_v25 = vpop.f32.mrf.mxu1  ;;  %2191 = vmatmul.mubr.msk.f32.gmra.mxu1 %vm650_vm3, %v2362_v9  ;;  %vm664_vm2 = vcmp.eq.s32.totalorder %v418_v38, %v2758_v63  ;;  %vm666_vm3 = vcmp.eq.s32.totalorder %v418_v38, %v2771_v7 }
 0x16b   : > { %v1488_v27 = vadd.f32 %v1487_v25, %v1102_v24  ;;  %2064 = vmatprep.mubr.msk.f32.mxu0 %vm653_vm4, %v2362_v9  ;;  %2192 = vmatprep.mubr.msk.f32.mxu1 %vm655_vm5, %v2362_v9  ;;  %vm669_vm4 = vcmp.eq.s32.totalorder %v421_v44, %v2763_v2  ;;  %vm671_vm5 = vcmp.eq.s32.totalorder %v421_v44, %v2766_v4 }
 0x16c   : > { %v1104_v28 = vpop.f32.mrf.mxu0  ;;  %v1489_v29 = vpop.f32.mrf.mxu1 }
 0x16d   : > { %1790 = vst [vmem:[%s3172_s15 + $0x20] sm:$0xff] %v1488_v27 }
 0x16e   : > { %v1107_v30 = vpop.f32.mrf.mxu0  ;;  %2065 = vmatmul.mubr.msk.f32.gmra.mxu0 %vm652_vm6, %v2362_v9  ;;  %v1492_v31 = vpop.f32.mrf.mxu1  ;;  %2193 = vmatmul.mubr.msk.f32.gmra.mxu1 %vm654_vm7, %v2362_v9  ;;  %vm668_vm6 = vcmp.eq.s32.totalorder %v421_v44, %v2758_v63  ;;  %vm670_vm7 = vcmp.eq.s32.totalorder %v421_v44, %v2771_v7 }
 0x16f   : > { %v1493_v33 = vadd.f32 %v1492_v31, %v1107_v30  ;;  %2066 = vmatprep.mubr.msk.f32.mxu0 %vm657_vm8, %v2362_v9  ;;  %2194 = vmatprep.mubr.msk.f32.mxu1 %vm659_vm9, %v2362_v9  ;;  %vm673_vm8 = vcmp.eq.s32.totalorder %v424_v49, %v2763_v2  ;;  %vm675_vm9 = vcmp.eq.s32.totalorder %v424_v49, %v2766_v4 }
 0x170   : > { %v1109_v34 = vpop.f32.mrf.mxu0  ;;  %v1494_v35 = vpop.f32.mrf.mxu1 }
 0x171   : > { %1791 = vst [vmem:[%s3172_s15 + $0x28] sm:$0xff] %v1493_v33 }
 0x172   : > { %v1112_v36 = vpop.f32.mrf.mxu0  ;;  %2067 = vmatmul.mubr.msk.f32.gmra.mxu0 %vm656_vm10, %v2362_v9  ;;  %v1497_v37 = vpop.f32.mrf.mxu1  ;;  %2195 = vmatmul.mubr.msk.f32.gmra.mxu1 %vm658_vm11, %v2362_v9  ;;  %vm672_vm10 = vcmp.eq.s32.totalorder %v424_v49, %v2758_v63  ;;  %vm674_vm11 = vcmp.eq.s32.totalorder %v424_v49, %v2771_v7 }
 0x173   : > { %v1498_v39 = vadd.f32 %v1497_v37, %v1112_v36  ;;  %2068 = vmatprep.mubr.msk.f32.mxu0 %vm661_vm12, %v2362_v9  ;;  %2196 = vmatprep.mubr.msk.f32.mxu1 %vm663_vm13, %v2362_v9  ;;  %vm677_vm12 = vcmp.eq.s32.totalorder %v427_v55, %v2763_v2  ;;  %vm679_vm13 = vcmp.eq.s32.totalorder %v427_v55, %v2766_v4 }
 0x174   : > { %v1114_v40 = vpop.f32.mrf.mxu0  ;;  %v1499_v41 = vpop.f32.mrf.mxu1 }
 0x175   : > { %1792 = vst [vmem:[%s3172_s15 + $0x30] sm:$0xff] %v1498_v39 }
 0x176   : > { %v1117_v42 = vpop.f32.mrf.mxu0  ;;  %2069 = vmatmul.mubr.msk.f32.gmra.mxu0 %vm660_vm14, %v2362_v9  ;;  %v1502_v43 = vpop.f32.mrf.mxu1  ;;  %2197 = vmatmul.mubr.msk.f32.gmra.mxu1 %vm662_vm15, %v2362_v9  ;;  %vm676_vm14 = vcmp.eq.s32.totalorder %v427_v55, %v2758_v63  ;;  %vm678_vm15 = vcmp.eq.s32.totalorder %v427_v55, %v2771_v7 }
 0x177   : > { %v1503_v45 = vadd.f32 %v1502_v43, %v1117_v42  ;;  %2070 = vmatprep.mubr.msk.f32.mxu0 %vm665_vm0, %v2362_v9  ;;  %2198 = vmatprep.mubr.msk.f32.mxu1 %vm667_vm1, %v2362_v9  ;;  %vm681_vm0 = vcmp.eq.s32.totalorder %v430_v61, %v2763_v2  ;;  %vm683_vm1 = vcmp.eq.s32.totalorder %v430_v61, %v2766_v4 }
 0x178   : > { %v1119_v46 = vpop.f32.mrf.mxu0  ;;  %v1504_v47 = vpop.f32.mrf.mxu1 }
 0x179   : > { %1793 = vst [vmem:[%s3172_s15 + $0x38] sm:$0xff] %v1503_v45 }
 0x17a   : > { %v1122_v3 = vpop.f32.mrf.mxu0  ;;  %2071 = vmatmul.mubr.msk.f32.gmra.mxu0 %vm664_vm2, %v2362_v9  ;;  %v1507_v48 = vpop.f32.mrf.mxu1  ;;  %2199 = vmatmul.mubr.msk.f32.gmra.mxu1 %vm666_vm3, %v2362_v9  ;;  %vm680_vm2 = vcmp.eq.s32.totalorder %v430_v61, %v2758_v63  ;;  %vm682_vm3 = vcmp.eq.s32.totalorder %v430_v61, %v2771_v7 }
 0x17b   : > { %v1508_v50 = vadd.f32 %v1507_v48, %v1122_v3  ;;  %2072 = vmatprep.mubr.msk.f32.mxu0 %vm669_vm4, %v2362_v9  ;;  %2200 = vmatprep.mubr.msk.f32.mxu1 %vm671_vm5, %v2362_v9  ;;  %vm685_vm4 = vcmp.eq.s32.totalorder %v433_v8, %v2763_v2  ;;  %vm687_vm5 = vcmp.eq.s32.totalorder %v433_v8, %v2766_v4 }
 0x17c   : > { %v1124_v51 = vpop.f32.mrf.mxu0  ;;  %v1509_v52 = vpop.f32.mrf.mxu1 }
 0x17d   : > { %1794 = vst [vmem:[%s3172_s15 + $0x40] sm:$0xff] %v1508_v50 }
 0x17e   : > { %v1127_v53 = vpop.f32.mrf.mxu0  ;;  %2073 = vmatmul.mubr.msk.f32.gmra.mxu0 %vm668_vm6, %v2362_v9  ;;  %v1512_v54 = vpop.f32.mrf.mxu1  ;;  %2201 = vmatmul.mubr.msk.f32.gmra.mxu1 %vm670_vm7, %v2362_v9  ;;  %vm684_vm6 = vcmp.eq.s32.totalorder %v433_v8, %v2758_v63  ;;  %vm686_vm7 = vcmp.eq.s32.totalorder %v433_v8, %v2771_v7 }
 0x17f   : > { %v1513_v56 = vadd.f32 %v1512_v54, %v1127_v53  ;;  %2074 = vmatprep.mubr.msk.f32.mxu0 %vm673_vm8, %v2362_v9  ;;  %2202 = vmatprep.mubr.msk.f32.mxu1 %vm675_vm9, %v2362_v9  ;;  %vm689_vm8 = vcmp.eq.s32.totalorder %v436_v15, %v2763_v2  ;;  %vm691_vm9 = vcmp.eq.s32.totalorder %v436_v15, %v2766_v4 }
 0x180   : > { %v1129_v57 = vpop.f32.mrf.mxu0  ;;  %v1514_v58 = vpop.f32.mrf.mxu1 }
 0x181   : > { %1795 = vst [vmem:[%s3172_s15 + $0x48] sm:$0xff] %v1513_v56 }
 0x182   : > { %v1132_v59 = vpop.f32.mrf.mxu0  ;;  %2075 = vmatmul.mubr.msk.f32.gmra.mxu0 %vm672_vm10, %v2362_v9  ;;  %v1517_v60 = vpop.f32.mrf.mxu1  ;;  %2203 = vmatmul.mubr.msk.f32.gmra.mxu1 %vm674_vm11, %v2362_v9  ;;  %vm688_vm10 = vcmp.eq.s32.totalorder %v436_v15, %v2758_v63  ;;  %vm690_vm11 = vcmp.eq.s32.totalorder %v436_v15, %v2771_v7 }
 0x183   : > { %v1518_v62 = vadd.f32 %v1517_v60, %v1132_v59  ;;  %2076 = vmatprep.mubr.msk.f32.mxu0 %vm677_vm12, %v2362_v9  ;;  %2204 = vmatprep.mubr.msk.f32.mxu1 %vm679_vm13, %v2362_v9  ;;  %vm693_vm12 = vcmp.eq.s32.totalorder %v439_v21, %v2763_v2  ;;  %vm695_vm13 = vcmp.eq.s32.totalorder %v439_v21, %v2766_v4 }
 0x184   : > { %v1134_v0 = vpop.f32.mrf.mxu0  ;;  %v1519_v1 = vpop.f32.mrf.mxu1 }
 0x185   : > { %1796 = vst [vmem:[%s3172_s15 + $0x50] sm:$0xff] %v1518_v62 }
 0x186   : > { %v1137_v5 = vpop.f32.mrf.mxu0  ;;  %2077 = vmatmul.mubr.msk.f32.gmra.mxu0 %vm676_vm14, %v2362_v9  ;;  %v1522_v6 = vpop.f32.mrf.mxu1  ;;  %2205 = vmatmul.mubr.msk.f32.gmra.mxu1 %vm678_vm15, %v2362_v9  ;;  %vm692_vm14 = vcmp.eq.s32.totalorder %v439_v21, %v2758_v63  ;;  %vm694_vm15 = vcmp.eq.s32.totalorder %v439_v21, %v2771_v7 }
 0x187   : > { %v1523_v10 = vadd.f32 %v1522_v6, %v1137_v5  ;;  %2078 = vmatprep.mubr.msk.f32.mxu0 %vm681_vm0, %v2362_v9  ;;  %2206 = vmatprep.mubr.msk.f32.mxu1 %vm683_vm1, %v2362_v9 }
 0x188   : > { %v1139_v11 = vpop.f32.mrf.mxu0  ;;  %v1524_v12 = vpop.f32.mrf.mxu1 }
 0x189   : > { %1797 = vst [vmem:[%s3172_s15 + $0x58] sm:$0xff] %v1523_v10 }
 0x18a   : > { %v1142_v13 = vpop.f32.mrf.mxu0  ;;  %2079 = vmatmul.mubr.msk.f32.gmra.mxu0 %vm680_vm2, %v2362_v9  ;;  %v1527_v14 = vpop.f32.mrf.mxu1  ;;  %2207 = vmatmul.mubr.msk.f32.gmra.mxu1 %vm682_vm3, %v2362_v9 }
 0x18b   : > { %v1528_v16 = vadd.f32 %v1527_v14, %v1142_v13  ;;  %2080 = vmatprep.mubr.msk.f32.mxu0 %vm685_vm4, %v2362_v9  ;;  %2208 = vmatprep.mubr.msk.f32.mxu1 %vm687_vm5, %v2362_v9 }
 0x18c   : > { %v1144_v17 = vpop.f32.mrf.mxu0  ;;  %v1529_v18 = vpop.f32.mrf.mxu1 }
 0x18d   : > { %1798 = vst [vmem:[%s3172_s15 + $0x60] sm:$0xff] %v1528_v16 }
 0x18e   : > { %v1147_v19 = vpop.f32.mrf.mxu0  ;;  %2081 = vmatmul.mubr.msk.f32.gmra.mxu0 %vm684_vm6, %v2362_v9  ;;  %v1532_v20 = vpop.f32.mrf.mxu1  ;;  %2209 = vmatmul.mubr.msk.f32.gmra.mxu1 %vm686_vm7, %v2362_v9 }
 0x18f   : > { %v1533_v22 = vadd.f32 %v1532_v20, %v1147_v19  ;;  %2082 = vmatprep.mubr.msk.f32.mxu0 %vm689_vm8, %v2362_v9  ;;  %2210 = vmatprep.mubr.msk.f32.mxu1 %vm691_vm9, %v2362_v9 }
 0x190   : > { %v1149_v23 = vpop.f32.mrf.mxu0  ;;  %v1534_v24 = vpop.f32.mrf.mxu1 }
 0x191   : > { %1799 = vst [vmem:[%s3172_s15 + $0x68] sm:$0xff] %v1533_v22 }
 0x192   : > { %v1152_v25 = vpop.f32.mrf.mxu0  ;;  %2083 = vmatmul.mubr.msk.f32.gmra.mxu0 %vm688_vm10, %v2362_v9  ;;  %v1537_v26 = vpop.f32.mrf.mxu1  ;;  %2211 = vmatmul.mubr.msk.f32.gmra.mxu1 %vm690_vm11, %v2362_v9 }
 0x193   : > { %v1538_v27 = vadd.f32 %v1537_v26, %v1152_v25  ;;  %2084 = vmatprep.mubr.msk.f32.mxu0 %vm693_vm12, %v2362_v9  ;;  %2212 = vmatprep.mubr.msk.f32.mxu1 %vm695_vm13, %v2362_v9 }
 0x194   : > { %v1154_v28 = vpop.f32.mrf.mxu0  ;;  %v1539_v29 = vpop.f32.mrf.mxu1 }
 0x195   : > { %1800 = vst [vmem:[%s3172_s15 + $0x70] sm:$0xff] %v1538_v27 }
 0x196   : > { %v1157_v30 = vpop.f32.mrf.mxu0  ;;  %2085 = vmatmul.mubr.msk.f32.gmra.mxu0 %vm692_vm14, %v2362_v9  ;;  %v1542_v2 = vpop.f32.mrf.mxu1  ;;  %2213 = vmatmul.mubr.msk.f32.gmra.mxu1 %vm694_vm15, %v2362_v9 }
 0x197   : > { %v1543_v4 = vadd.f32 %v1542_v2, %v1157_v30 }
 0x198   : > { %v1159_v31 = vpop.f32.mrf.mxu0  ;;  %v1544_v32 = vpop.f32.mrf.mxu1 }
 0x199   : > { %1801 = vst [vmem:[%s3172_s15 + $0x78] sm:$0xff] %v1543_v4 }
 0x19a   : > { %v1162_v33 = vpop.f32.mrf.mxu0  ;;  %v1547_v34 = vpop.f32.mrf.mxu1 }
 0x19b   : > { %v1548_v35 = vadd.f32 %v1547_v34, %v1162_v33 }
 0x19c   : > { %v1164_v63 = vpop.f32.mrf.mxu0  ;;  %v1549_v36 = vpop.f32.mrf.mxu1 }
 0x19d   : > { %1802 = vst [vmem:[%s3172_s15 + $0x80] sm:$0xff] %v1548_v35 }
 0x19e   : > { %v1167_v7 = vpop.f32.mrf.mxu0  ;;  %v1552_v37 = vpop.f32.mrf.mxu1 }
 0x19f   : > { %v1553_v38 = vadd.f32 %v1552_v37, %v1167_v7 }
 0x1a0   : > { %v1169_v39 = vpop.f32.mrf.mxu0  ;;  %v1554_v40 = vpop.f32.mrf.mxu1 }
 0x1a1   : > { %1803 = vst [vmem:[%s3172_s15 + $0x88] sm:$0xff] %v1553_v38 }
 0x1a2   : > { %v1172_v9 = vpop.f32.mrf.mxu0  ;;  %v1557_v41 = vpop.f32.mrf.mxu1 }
 0x1a3   : > { %v1558_v42 = vadd.f32 %v1557_v41, %v1172_v9 }
 0x1a4   : > { %v1174_v43 = vpop.f32.mrf.mxu0  ;;  %v1559_v44 = vpop.f32.mrf.mxu1 }
 0x1a5   : > { %1804 = vst [vmem:[%s3172_s15 + $0x90] sm:$0xff] %v1558_v42 }
 0x1a6   : > { %v1177_v45 = vpop.f32.mrf.mxu0  ;;  %v1562_v46 = vpop.f32.mrf.mxu1 }
 0x1a7   : > { %v1563_v47 = vadd.f32 %v1562_v46, %v1177_v45 }
 0x1a8   : > { %v1179_v3 = vpop.f32.mrf.mxu0  ;;  %v1564_v48 = vpop.f32.mrf.mxu1 }
 0x1a9   : > { %1805 = vst [vmem:[%s3172_s15 + $0x98] sm:$0xff] %v1563_v47 }
 0x1aa   : > { %v1182_v49 = vpop.f32.mrf.mxu0  ;;  %v1567_v50 = vpop.f32.mrf.mxu1 }
 0x1ab   : > { %v1568_v51 = vadd.f32 %v1567_v50, %v1182_v49 }
 0x1ac   : > { %v1184_v52 = vpop.f32.mrf.mxu0  ;;  %v1569_v53 = vpop.f32.mrf.mxu1 }
 0x1ad   : > { %1806 = vst [vmem:[%s3172_s15 + $0xa0] sm:$0xff] %v1568_v51 }
 0x1ae   : > { %v1187_v54 = vpop.f32.mrf.mxu0  ;;  %v1572_v55 = vpop.f32.mrf.mxu1 }
 0x1af   : > { %v1573_v56 = vadd.f32 %v1572_v55, %v1187_v54 }
 0x1b0   : > { %v1189_v57 = vpop.f32.mrf.mxu0  ;;  %v1574_v58 = vpop.f32.mrf.mxu1 }
 0x1b1   : > { %1807 = vst [vmem:[%s3172_s15 + $0xa8] sm:$0xff] %v1573_v56 }
 0x1b2   : > { %v1192_v59 = vpop.f32.mrf.mxu0  ;;  %v1577_v60 = vpop.f32.mrf.mxu1 }
 0x1b3   : > { %v1578_v61 = vadd.f32 %v1577_v60, %v1192_v59 }
 0x1b4   : > { %v1194_v62 = vpop.f32.mrf.mxu0  ;;  %v1579_v0 = vpop.f32.mrf.mxu1 }
 0x1b5   : > { %1808 = vst [vmem:[%s3172_s15 + $0xb0] sm:$0xff] %v1578_v61 }
 0x1b6   : > { %v1197_v1 = vpop.f32.mrf.mxu0  ;;  %v1582_v5 = vpop.f32.mrf.mxu1 }
 0x1b7   : > { %v1583_v6 = vadd.f32 %v1582_v5, %v1197_v1 }
 0x1b8   : > { %v1199_v8 = vpop.f32.mrf.mxu0  ;;  %v1584_v10 = vpop.f32.mrf.mxu1 }
 0x1b9   : > { %1809 = vst [vmem:[%s3172_s15 + $0xb8] sm:$0xff] %v1583_v6 }
 0x1ba   : > { %v1202_v11 = vpop.f32.mrf.mxu0  ;;  %v1587_v12 = vpop.f32.mrf.mxu1 }
 0x1bb   : > { %v1588_v13 = vadd.f32 %v1587_v12, %v1202_v11 }
 0x1bc   : > { %v1204_v14 = vpop.f32.mrf.mxu0  ;;  %v1589_v15 = vpop.f32.mrf.mxu1 }
 0x1bd   : > { %1810 = vst [vmem:[%s3172_s15 + $0xc0] sm:$0xff] %v1588_v13 }
 0x1be   : > { %v1207_v16 = vpop.f32.mrf.mxu0  ;;  %v1592_v17 = vpop.f32.mrf.mxu1 }
 0x1bf   : > { %v1593_v18 = vadd.f32 %v1592_v17, %v1207_v16 }
 0x1c0   : > { %v1209_v19 = vpop.f32.mrf.mxu0  ;;  %v1594_v20 = vpop.f32.mrf.mxu1 }
 0x1c1   : > { %1811 = vst [vmem:[%s3172_s15 + $0xc8] sm:$0xff] %v1593_v18 }
 0x1c2   : > { %v1212_v21 = vpop.f32.mrf.mxu0  ;;  %v1597_v22 = vpop.f32.mrf.mxu1 }
 0x1c3   : > { %v1598_v23 = vadd.f32 %v1597_v22, %v1212_v21 }
 0x1c4   : > { %v1214_v24 = vpop.f32.mrf.mxu0  ;;  %v1599_v25 = vpop.f32.mrf.mxu1 }
 0x1c5   : > { %1812 = vst [vmem:[%s3172_s15 + $0xd0] sm:$0xff] %v1598_v23 }
 0x1c6   : > { %v1217_v26 = vpop.f32.mrf.mxu0  ;;  %v1602_v27 = vpop.f32.mrf.mxu1 }
 0x1c7   : > { %v1603_v28 = vadd.f32 %v1602_v27, %v1217_v26 }
 0x1c8   : > { %v1219_v29 = vpop.f32.mrf.mxu0  ;;  %v1604_v30 = vpop.f32.mrf.mxu1 }
 0x1c9   : > { %1813 = vst [vmem:[%s3172_s15 + $0xd8] sm:$0xff] %v1603_v28 }
 0x1ca   : > { %v1222_v2 = vpop.f32.mrf.mxu0  ;;  %v1607_v4 = vpop.f32.mrf.mxu1 }
 0x1cb   : > { %v1608_v31 = vadd.f32 %v1607_v4, %v1222_v2 }
 0x1cc   : > { %v1224_v32 = vpop.f32.mrf.mxu0  ;;  %v1609_v33 = vpop.f32.mrf.mxu1 }
 0x1cd   : > { %1814 = vst [vmem:[%s3172_s15 + $0xe0] sm:$0xff] %v1608_v31 }
 0x1ce   : > { %v1227_v34 = vpop.f32.mrf.mxu0  ;;  %v1612_v35 = vpop.f32.mrf.mxu1 }
 0x1cf   : > { %v1613_v63 = vadd.f32 %v1612_v35, %v1227_v34 }
 0x1d0   : > { %v1229_v36 = vpop.f32.mrf.mxu0  ;;  %v1614_v7 = vpop.f32.mrf.mxu1 }
 0x1d1   : > { %1815 = vst [vmem:[%s3172_s15 + $0xe8] sm:$0xff] %v1613_v63 }
 0x1d2   : > { %v1232_v37 = vpop.f32.mrf.mxu0  ;;  %v1617_v38 = vpop.f32.mrf.mxu1 }
 0x1d3   : > { %v1618_v39 = vadd.f32 %v1617_v38, %v1232_v37 }
 0x1d4   : > { %v1234_v40 = vpop.f32.mrf.mxu0  ;;  %v1619_v9 = vpop.f32.mrf.mxu1 }
 0x1d5   : > { %1816 = vst [vmem:[%s3172_s15 + $0xf0] sm:$0xff] %v1618_v39 }
 0x1d6   : > { %v1237_v41 = vpop.f32.mrf.mxu0  ;;  %v1622_v42 = vpop.f32.mrf.mxu1 }
 0x1d7   : > { %v1623_v43 = vadd.f32 %v1622_v42, %v1237_v41 }
 0x1d8   : > { %v1239_v44 = vpop.f32.mrf.mxu0  ;;  %v1624_v45 = vpop.f32.mrf.mxu1 }
 0x1d9   : > { %1817 = vst [vmem:[%s3172_s15 + $0xf8] sm:$0xff] %v1623_v43 }
 0x1da   : > { %v1242_v46 = vpop.f32.mrf.mxu0  ;;  %v1627_v47 = vpop.f32.mrf.mxu1 }
 0x1db   : > { %v1628_v3 = vadd.f32 %v1627_v47, %v1242_v46 }
 0x1dc   : > { %v1244_v48 = vpop.f32.mrf.mxu0  ;;  %v1629_v49 = vpop.f32.mrf.mxu1 }
 0x1dd   : > { %1818 = vst [vmem:[%s3172_s15 + $0x100] sm:$0xff] %v1628_v3 }
 0x1de   : > { %v1247_v50 = vpop.f32.mrf.mxu0  ;;  %v1632_v51 = vpop.f32.mrf.mxu1 }
 0x1df   : > { %v1633_v52 = vadd.f32 %v1632_v51, %v1247_v50 }
 0x1e0   : > { %v1249_v53 = vpop.f32.mrf.mxu0  ;;  %v1634_v54 = vpop.f32.mrf.mxu1 }
 0x1e1   : > { %1819 = vst [vmem:[%s3172_s15 + $0x108] sm:$0xff] %v1633_v52 }
 0x1e2   : > { %v1252_v55 = vpop.f32.mrf.mxu0  ;;  %v1637_v56 = vpop.f32.mrf.mxu1 }
 0x1e3   : > { %v1638_v57 = vadd.f32 %v1637_v56, %v1252_v55 }
 0x1e4   : > { %v1254_v58 = vpop.f32.mrf.mxu0  ;;  %v1639_v59 = vpop.f32.mrf.mxu1 }
 0x1e5   : > { %1820 = vst [vmem:[%s3172_s15 + $0x110] sm:$0xff] %v1638_v57 }
 0x1e6   : > { %v1257_v60 = vpop.f32.mrf.mxu0  ;;  %v1642_v61 = vpop.f32.mrf.mxu1 }
 0x1e7   : > { %v1643_v62 = vadd.f32 %v1642_v61, %v1257_v60 }
 0x1e8   : > { %v1259_v0 = vpop.f32.mrf.mxu0  ;;  %v1644_v1 = vpop.f32.mrf.mxu1 }
 0x1e9   : > { %1821 = vst [vmem:[%s3172_s15 + $0x118] sm:$0xff] %v1643_v62 }
 0x1ea   : > { %v1262_v5 = vpop.f32.mrf.mxu0  ;;  %v1647_v6 = vpop.f32.mrf.mxu1 }
 0x1eb   : > { %v1648_v8 = vadd.f32 %v1647_v6, %v1262_v5 }
 0x1ec   : > { %v1264_v10 = vpop.f32.mrf.mxu0  ;;  %v1649_v11 = vpop.f32.mrf.mxu1 }
 0x1ed   : > { %1822 = vst [vmem:[%s3172_s15 + $0x120] sm:$0xff] %v1648_v8 }
 0x1ee   : > { %v1267_v12 = vpop.f32.mrf.mxu0  ;;  %v1652_v13 = vpop.f32.mrf.mxu1 }
 0x1ef   : > { %v1653_v14 = vadd.f32 %v1652_v13, %v1267_v12 }
 0x1f0   : > { %v1269_v15 = vpop.f32.mrf.mxu0  ;;  %v1654_v16 = vpop.f32.mrf.mxu1 }
 0x1f1   : > { %1823 = vst [vmem:[%s3172_s15 + $0x128] sm:$0xff] %v1653_v14 }
 0x1f2   : > { %v1272_v17 = vpop.f32.mrf.mxu0  ;;  %v1657_v18 = vpop.f32.mrf.mxu1 }
 0x1f3   : > { %v1658_v19 = vadd.f32 %v1657_v18, %v1272_v17 }
 0x1f4   : > { %v1274_v20 = vpop.f32.mrf.mxu0  ;;  %v1659_v21 = vpop.f32.mrf.mxu1 }
 0x1f5   : > { %1824 = vst [vmem:[%s3172_s15 + $0x130] sm:$0xff] %v1658_v19 }
 0x1f6   : > { %v1277_v22 = vpop.f32.mrf.mxu0  ;;  %v1662_v23 = vpop.f32.mrf.mxu1 }
 0x1f7   : > { %v1663_v24 = vadd.f32 %v1662_v23, %v1277_v22 }
 0x1f8   : > { %v1279_v25 = vpop.f32.mrf.mxu0  ;;  %v1664_v26 = vpop.f32.mrf.mxu1 }
 0x1f9   : > { %1825 = vst [vmem:[%s3172_s15 + $0x138] sm:$0xff] %v1663_v24 }
 0x1fa   : > { %v1282_v27 = vpop.f32.mrf.mxu0  ;;  %v1667_v28 = vpop.f32.mrf.mxu1 }
 0x1fb   : > { %v1668_v29 = vadd.f32 %v1667_v28, %v1282_v27 }
 0x1fc   : > { %v1284_v30 = vpop.f32.mrf.mxu0  ;;  %v1669_v2 = vpop.f32.mrf.mxu1 }
 0x1fd   : > { %1826 = vst [vmem:[%s3172_s15 + $0x140] sm:$0xff] %v1668_v29 }
 0x1fe   : > { %v1287_v4 = vpop.f32.mrf.mxu0  ;;  %v1672_v31 = vpop.f32.mrf.mxu1 }
 0x1ff   : > { %v1673_v32 = vadd.f32 %v1672_v31, %v1287_v4 }
 0x200   : > { %v1289_v33 = vpop.f32.mrf.mxu0  ;;  %v1674_v34 = vpop.f32.mrf.mxu1 }
 0x201   : > { %1827 = vst [vmem:[%s3172_s15 + $0x148] sm:$0xff] %v1673_v32 }
 0x202   : > { %v1292_v35 = vpop.f32.mrf.mxu0  ;;  %v1677_v63 = vpop.f32.mrf.mxu1 }
 0x203   : > { %v1678_v36 = vadd.f32 %v1677_v63, %v1292_v35 }
 0x204   : > { %v1294_v7 = vpop.f32.mrf.mxu0  ;;  %v1679_v37 = vpop.f32.mrf.mxu1 }
 0x205   : > { %1828 = vst [vmem:[%s3172_s15 + $0x150] sm:$0xff] %v1678_v36 }
 0x206   : > { %v1297_v38 = vpop.f32.mrf.mxu0  ;;  %v1682_v39 = vpop.f32.mrf.mxu1 }
 0x207   : > { %v1683_v40 = vadd.f32 %v1682_v39, %v1297_v38 }
 0x208   : > { %v1299_v9 = vpop.f32.mrf.mxu0  ;;  %v1684_v41 = vpop.f32.mrf.mxu1 }
 0x209   : > { %1829 = vst [vmem:[%s3172_s15 + $0x158] sm:$0xff] %v1683_v40 }
 0x20a   : > { %v1302_v42 = vpop.f32.mrf.mxu0  ;;  %v1687_v43 = vpop.f32.mrf.mxu1 }
 0x20b   : > { %v1688_v44 = vadd.f32 %v1687_v43, %v1302_v42 }
 0x20c   : > { %v1304_v45 = vpop.f32.mrf.mxu0  ;;  %v1689_v46 = vpop.f32.mrf.mxu1 }
 0x20d   : > { %1830 = vst [vmem:[%s3172_s15 + $0x160] sm:$0xff] %v1688_v44 }
 0x20e   : > { %v1307_v47 = vpop.f32.mrf.mxu0  ;;  %v1692_v3 = vpop.f32.mrf.mxu1 }
 0x20f   : > { %v1693_v48 = vadd.f32 %v1692_v3, %v1307_v47 }
 0x210   : > { %v1309_v49 = vpop.f32.mrf.mxu0  ;;  %v1694_v50 = vpop.f32.mrf.mxu1 }
 0x211   : > { %1831 = vst [vmem:[%s3172_s15 + $0x168] sm:$0xff] %v1693_v48 }
 0x212   : > { %v1312_v51 = vpop.f32.mrf.mxu0  ;;  %v1697_v52 = vpop.f32.mrf.mxu1 }
 0x213   : > { %v1698_v53 = vadd.f32 %v1697_v52, %v1312_v51 }
 0x214   : > { %v1314_v54 = vpop.f32.mrf.mxu0  ;;  %v1699_v55 = vpop.f32.mrf.mxu1 }
 0x215   : > { %1832 = vst [vmem:[%s3172_s15 + $0x170] sm:$0xff] %v1698_v53 }
 0x216   : > { %v1317_v56 = vpop.f32.mrf.mxu0  ;;  %v1702_v57 = vpop.f32.mrf.mxu1 }
 0x217   : > { %v1703_v58 = vadd.f32 %v1702_v57, %v1317_v56 }
 0x218   : > { %v1319_v59 = vpop.f32.mrf.mxu0  ;;  %v1704_v60 = vpop.f32.mrf.mxu1 }
 0x219   : > { %1833 = vst [vmem:[%s3172_s15 + $0x178] sm:$0xff] %v1703_v58 }
 0x21a   : > { %v1322_v61 = vpop.f32.mrf.mxu0  ;;  %v1707_v62 = vpop.f32.mrf.mxu1 }
 0x21b   : > { %v1708_v0 = vadd.f32 %v1707_v62, %v1322_v61 }
 0x21c   : > { %v1324_v1 = vpop.f32.mrf.mxu0  ;;  %v1709_v5 = vpop.f32.mrf.mxu1 }
 0x21d   : > { %1834 = vst [vmem:[%s3172_s15 + $0x180] sm:$0xff] %v1708_v0 }
 0x21e   : > { %v1327_v6 = vpop.f32.mrf.mxu0  ;;  %v1712_v8 = vpop.f32.mrf.mxu1 }
 0x21f   : > { %v1713_v10 = vadd.f32 %v1712_v8, %v1327_v6 }
 0x220   : > { %v1329_v11 = vpop.f32.mrf.mxu0  ;;  %v1714_v12 = vpop.f32.mrf.mxu1 }
 0x221   : > { %1835 = vst [vmem:[%s3172_s15 + $0x188] sm:$0xff] %v1713_v10 }
 0x222   : > { %v1332_v13 = vpop.f32.mrf.mxu0  ;;  %v1717_v14 = vpop.f32.mrf.mxu1 }
 0x223   : > { %v1718_v15 = vadd.f32 %v1717_v14, %v1332_v13 }
 0x224   : > { %v1334_v16 = vpop.f32.mrf.mxu0  ;;  %v1719_v17 = vpop.f32.mrf.mxu1 }
 0x225   : > { %1836 = vst [vmem:[%s3172_s15 + $0x190] sm:$0xff] %v1718_v15 }
 0x226   : > { %v1337_v18 = vpop.f32.mrf.mxu0  ;;  %v1722_v19 = vpop.f32.mrf.mxu1 }
 0x227   : > { %v1723_v20 = vadd.f32 %v1722_v19, %v1337_v18 }
 0x228   : > { %v1339_v21 = vpop.f32.mrf.mxu0  ;;  %v1724_v22 = vpop.f32.mrf.mxu1 }
 0x229   : > { %1837 = vst [vmem:[%s3172_s15 + $0x198] sm:$0xff] %v1723_v20 }
 0x22a   : > { %v1342_v23 = vpop.f32.mrf.mxu0  ;;  %v1727_v24 = vpop.f32.mrf.mxu1 }
 0x22b   : > { %v1728_v25 = vadd.f32 %v1727_v24, %v1342_v23 }
 0x22c   : > { %v1344_v26 = vpop.f32.mrf.mxu0  ;;  %v1729_v27 = vpop.f32.mrf.mxu1 }
 0x22d   : > { %1838 = vst [vmem:[%s3172_s15 + $0x1a0] sm:$0xff] %v1728_v25 }
 0x22e   : > { %v1347_v28 = vpop.f32.mrf.mxu0  ;;  %v1732_v29 = vpop.f32.mrf.mxu1 }
 0x22f   : > { %v1733_v30 = vadd.f32 %v1732_v29, %v1347_v28 }
 0x230   : > { %v1349_v2 = vpop.f32.mrf.mxu0  ;;  %v1734_v4 = vpop.f32.mrf.mxu1 }
 0x231   : > { %1839 = vst [vmem:[%s3172_s15 + $0x1a8] sm:$0xff] %v1733_v30 }
 0x232   : > { %v1352_v31 = vpop.f32.mrf.mxu0  ;;  %v1737_v32 = vpop.f32.mrf.mxu1 }
 0x233   : > { %v1738_v33 = vadd.f32 %v1737_v32, %v1352_v31 }
 0x234   : > { %v1354_v34 = vpop.f32.mrf.mxu0  ;;  %v1739_v35 = vpop.f32.mrf.mxu1 }
 0x235   : > { %1840 = vst [vmem:[%s3172_s15 + $0x1b0] sm:$0xff] %v1738_v33 }
 0x236   : > { %v1357_v63 = vpop.f32.mrf.mxu0  ;;  %v1742_v36 = vpop.f32.mrf.mxu1 }
 0x237   : > { %v1743_v7 = vadd.f32 %v1742_v36, %v1357_v63 }
 0x238   : > { %v1359_v37 = vpop.f32.mrf.mxu0  ;;  %v1744_v38 = vpop.f32.mrf.mxu1 }
 0x239   : > { %1841 = vst [vmem:[%s3172_s15 + $0x1b8] sm:$0xff] %v1743_v7 }
 0x23a   : > { %v1362_v39 = vpop.f32.mrf.mxu0  ;;  %v1747_v40 = vpop.f32.mrf.mxu1 }
 0x23b   : > { %v1748_v9 = vadd.f32 %v1747_v40, %v1362_v39 }
 0x23c   : > { %v1364_v41 = vpop.f32.mrf.mxu0  ;;  %v1749_v42 = vpop.f32.mrf.mxu1 }
 0x23d   : > { %1842 = vst [vmem:[%s3172_s15 + $0x1c0] sm:$0xff] %v1748_v9 }
 0x23e   : > { %v1367_v43 = vpop.f32.mrf.mxu0  ;;  %v1752_v44 = vpop.f32.mrf.mxu1 }
 0x23f   : > { %v1753_v45 = vadd.f32 %v1752_v44, %v1367_v43 }
 0x240   : > { %v1369_v46 = vpop.f32.mrf.mxu0  ;;  %v1754_v47 = vpop.f32.mrf.mxu1 }
 0x241   : > { %1843 = vst [vmem:[%s3172_s15 + $0x1c8] sm:$0xff] %v1753_v45 }
 0x242   : > { %v1372_v3 = vpop.f32.mrf.mxu0  ;;  %v1757_v48 = vpop.f32.mrf.mxu1 }
 0x243   : > { %v1758_v49 = vadd.f32 %v1757_v48, %v1372_v3 }
 0x244   : > { %v1374_v50 = vpop.f32.mrf.mxu0  ;;  %v1759_v51 = vpop.f32.mrf.mxu1 }
 0x245   : > { %1844 = vst [vmem:[%s3172_s15 + $0x1d0] sm:$0xff] %v1758_v49 }
 0x246   : > { %v1377_v52 = vpop.f32.mrf.mxu0  ;;  %v1762_v53 = vpop.f32.mrf.mxu1 }
 0x247   : > { %v1763_v54 = vadd.f32 %v1762_v53, %v1377_v52 }
 0x248   : > { %v1379_v55 = vpop.f32.mrf.mxu0  ;;  %v1764_v56 = vpop.f32.mrf.mxu1 }
 0x249   : > { %1845 = vst [vmem:[%s3172_s15 + $0x1d8] sm:$0xff] %v1763_v54 }
 0x24a   : > { %v1382_v57 = vpop.f32.mrf.mxu0  ;;  %v1767_v58 = vpop.f32.mrf.mxu1 }
 0x24b   : > { %v1768_v59 = vadd.f32 %v1767_v58, %v1382_v57 }
 0x24c   : > { %v1384_v60 = vpop.f32.mrf.mxu0  ;;  %v1769_v61 = vpop.f32.mrf.mxu1 }
 0x24d   : > { %1846 = vst [vmem:[%s3172_s15 + $0x1e0] sm:$0xff] %v1768_v59 }
 0x24e   : > { %v1387_v62 = vpop.f32.mrf.mxu0  ;;  %v1772_v0 = vpop.f32.mrf.mxu1 }
 0x24f   : > { %v1773_v1 = vadd.f32 %v1772_v0, %v1387_v62 }
 0x250   : > { %v1389_v5 = vpop.f32.mrf.mxu0  ;;  %v1774_v6 = vpop.f32.mrf.mxu1 }
 0x251   : > { %1847 = vst [vmem:[%s3172_s15 + $0x1e8] sm:$0xff] %v1773_v1 }
 0x252   : > { %v1392_v8 = vpop.f32.mrf.mxu0  ;;  %v1777_v10 = vpop.f32.mrf.mxu1 }
 0x253   : > { %v1778_v11 = vadd.f32 %v1777_v10, %v1392_v8 }
 0x254   : > { %v1394_v12 = vpop.f32.mrf.mxu0  ;;  %v1779_v13 = vpop.f32.mrf.mxu1 }
 0x255   : > { %1848 = vst [vmem:[%s3172_s15 + $0x1f0] sm:$0xff] %v1778_v11 }
 0x256   : > { %v1397_v14 = vpop.f32.mrf.mxu0  ;;  %v1782_v15 = vpop.f32.mrf.mxu1 }
 0x257   : > { %v1783_v16 = vadd.f32 %v1782_v15, %v1397_v14 }
 0x258   : > { %v1399_v17 = vpop.f32.mrf.mxu0  ;;  %v1784_v18 = vpop.f32.mrf.mxu1 }
 0x259   : > { %1849 = vst [vmem:[%s3172_s15 + $0x1f8] sm:$0xff] %v1783_v16 }
 0x25a   : > { %2295 = shalt.err (!%p2292_p5)
}
 0x25b   : > { %s2296_s30 = scalar_lea.hbm %s3358_s25, 8192  ;;  %s2300_s5 = scalar_lea.hbm %s3412_s2, 16384 }
 0x25c   : > { %p2297_p6 = scmp.ne.s32.totalorder %s3358_s25, %s2296_s30  ;;  %p2301_p10 = scmp.lt.s32.totalorder %s3358_s25, %s3412_s2 }
 0x25d   : > { %p2302_p11 = scmp.lt.s32.totalorder %s2300_s5, %s2296_s30 }
 0x25e   : > { %p2298_p7 = pnand %p2297_p6, %p2421_p4 }
 0x25f   : > { %p2303_p12 = por %p2302_p11, %p2301_p10 }
 0x260   : > { %p2299_p9 = pneg %p2298_p7 }
 0x262   : > { %p2304_p13 = pnand %p2303_p12, %p2299_p9 }
 0x264   : > { %2307 = shalt.err (!%p2304_p13)
}
 0x265   : > { %s2364_s18 = smov 128   ;;  %s2365_s8 = smov 8  }
 0x266   : > { %2220 = dma.vmem_to_hbm [thread:$0]  (%p2421_p4), %s3360_s20, 8192, %s3358_s25, %s3365_s12, %s2364_s18, %s2364_s18, %s2365_s8  }
 0x267 PF: > { %p2226_p0 = scmp.ge.s32.totalorder %s2358_s14, 2  ;;  %s1879_s15 = sand.u32 1, %s2338_s9  }
 0x268   : > { %s1880_s16 = scalar_lea.sflag [#allocation3], %s1879_s15 }
 0x269   : > { %p2223_p1 = pnand %p2226_p0, %p2428_p8 }
 0x26b   : > { %p2224_p2 = pneg %p2223_p1 }
 0x26d   : > { %2333 = dma.done.wait (%p2224_p2), %s1880_s16, 8192  }
 0x26e   : > { %2335 = vsyncadd (%p2224_p2), %s1880_s16, 4294959104  ;;  %s15_s14 = sadd.s32 1, %s2358_s14   ;;  %s3415_s9 = smov %s2342_s10 }
 0x26f   : > { %p12_p3 = scmp.ge.s32.totalorder %s15_s14, 4   ;;  %s3416_s10 = smov %s2346_s11 }
 0x270   : > { %s3417_s11 = smov %s2434_s22  ;;  %s3418_s12 = smov %s2354_s13 }
 0x271   : > { %s3419_s13 = smov %s3421_s17  ;;  %14 = sbr.rel (!%p12_p3) target bundleno = 4 (0x4), region = 66 }
 0x276   :  { %1885 = vsyncpa [#allocation3], 1 }
 0x277   :  { %1887 = vsyncpa [#allocation3 + $0x1], 1 }

</bundles_post_ra>
